<compile_context>
chip_gen: v7x
topology: tpu7x:2x2x1
jax: 0.10.0
libtpu: 0.0.40
codegen_flags: <defaults>
</compile_context>

<pallas_src>
import functools

import jax
import jax.numpy as jnp
from jax.experimental import pallas as pl
from jax.experimental.pallas import tpu as pltpu  # noqa: F401  (TPU backend assumed)

_BN_EPS = 1e-5


# ----------------------------------------------------------------------------
# Fused kernel: all LSTM layers (unrolled over time) + FC/BN/ReLU head.
# ----------------------------------------------------------------------------
def _fused_lstm_head_kernel(num_layers, hidden_dim, *refs):
    # refs = [x_ref,
    #         (w_ih_t, w_hh_t, bias) * num_layers,
    #         w1, b1, g1, be1, w2, b2, g2, be2, w3, b3,
    #         out_ref]
    x_ref = refs[0]
    lstm_refs = refs[1:1 + 3 * num_layers]
    (w1_ref, b1_ref, g1_ref, be1_ref,
     w2_ref, b2_ref, g2_ref, be2_ref,
     w3_ref, b3_ref, out_ref) = refs[1 + 3 * num_layers:]

    B, T, _ = x_ref.shape
    H = hidden_dim
    f32 = jnp.float32

    # Lane mask selecting the tanh gate (g) lanes of the packed (i,f,g,o) vector.
    lane = jax.lax.broadcasted_iota(jnp.int32, (B, 4 * H), 1)
    tanh_lanes = (lane >= 2 * H) & (lane < 3 * H)

    def activate(gates):
        # sigmoid on i/f/o lanes, tanh on g lanes — full-vreg EUP work.
        return jnp.where(tanh_lanes, jnp.tanh(gates), jax.nn.sigmoid(gates))

    layer_in = x_ref[...].astype(f32)                      # (B, T, d_in)

    h = None
    for l in range(num_layers):
        w_ih = lstm_refs[3 * l + 0][...]                   # (d_in, 4H)
        w_hh = lstm_refs[3 * l + 1][...]                   # (H,    4H)
        bias = lstm_refs[3 * l + 2][...]                   # (1,    4H) = b_ih + b_hh

        d_in = layer_in.shape[-1]
        # Hoisted input projection: one matmul for all T timesteps.
        xp = jnp.dot(layer_in.reshape(B * T, d_in), w_ih,
                     preferred_element_type=f32) + bias    # (B*T, 4H)
        xp = xp.reshape(B, T, 4 * H)

        h = jnp.zeros((B, H), f32)
        c = jnp.zeros((B, H), f32)
        hs = []
        for t in range(T):                                 # static unroll (T small)
            gates = xp[:, t, :] + jnp.dot(h, w_hh, preferred_element_type=f32)
            act = activate(gates)                          # (B, 4H)
            i_g = act[:, 0 * H:1 * H]
            f_g = act[:, 1 * H:2 * H]
            g_g = act[:, 2 * H:3 * H]
            o_g = act[:, 3 * H:4 * H]
            c = f_g * c + i_g * g_g
            h = o_g * jnp.tanh(c)
            hs.append(h)

        if l + 1 < num_layers:
            # Next layer consumes the full hidden sequence (kept in VMEM/vregs).
            layer_in = jnp.stack(hs, axis=1)               # (B, T, H)

    # h == output[:, -1, :]  (flatten is a no-op on a 2-D tensor)

    # ----- head: fc1 -> bn1 -> relu -> fc2 -> bn2 -> relu -> fc3 -------------
    def bn_relu(y, gamma, beta):
        mu = jnp.mean(y, axis=0, keepdims=True)
        var = jnp.mean((y - mu) ** 2, axis=0, keepdims=True)   # biased (train mode)
        y = (y - mu) * jax.lax.rsqrt(var + _BN_EPS) * gamma + beta
        return jnp.maximum(y, 0.0)

    y = jnp.dot(h, w1_ref[...], preferred_element_type=f32) + b1_ref[...]
    y = bn_relu(y, g1_ref[...], be1_ref[...])
    y = jnp.dot(y, w2_ref[...], preferred_element_type=f32) + b2_ref[...]
    y = bn_relu(y, g2_ref[...], be2_ref[...])
    y = jnp.dot(y, w3_ref[...], preferred_element_type=f32) + b3_ref[...]
    out_ref[...] = y.astype(out_ref.dtype)


# ----------------------------------------------------------------------------
# Wrapper: one pallas_call for the whole forward pass.
# ----------------------------------------------------------------------------
@functools.partial(jax.jit, static_argnames=("num_layers", "hidden_dim"))
def lstm_model_forward(inp_btd, params, *, num_layers, hidden_dim):
    # inp_btd: (B, T, input_dim) — PyTorch batch_first layout, consumed directly.
    B = inp_btd.shape[0]
    out_dim = params["w3"].shape[1]

    args = [inp_btd.astype(jnp.float32)]
    for lp in params["lstm"]:
        args += [lp["w_ih_t"], lp["w_hh_t"], lp["bias"]]
    args += [params["w1"], params["b1"], params["g1"], params["be1"],
             params["w2"], params["b2"], params["g2"], params["be2"],
             params["w3"], params["b3"]]

    kernel = functools.partial(_fused_lstm_head_kernel, num_layers, hidden_dim)
    return pl.pallas_call(
        kernel,
        out_shape=jax.ShapeDtypeStruct((B, out_dim), jnp.float32),
    )(*args)


# ----------------------------------------------------------------------------
# Parameter construction (deterministic, PyTorch-like uniform init)
# ----------------------------------------------------------------------------
def init_params(key, input_dim, hidden_dim, output_dim, num_layers):
    params = {"lstm": []}
    stdv = 1.0 / jnp.sqrt(hidden_dim)
    for layer in range(num_layers):
        d_in = input_dim if layer == 0 else hidden_dim
        key, k1, k2, k3, k4 = jax.random.split(key, 5)
        w_ih = jax.random.uniform(k1, (4 * hidden_dim, d_in), jnp.float32, -stdv, stdv)
        w_hh = jax.random.uniform(k2, (4 * hidden_dim, hidden_dim), jnp.float32, -stdv, stdv)
        b_ih = jax.random.uniform(k3, (4 * hidden_dim,), jnp.float32, -stdv, stdv)
        b_hh = jax.random.uniform(k4, (4 * hidden_dim,), jnp.float32, -stdv, stdv)
        params["lstm"].append({
            "w_ih_t": w_ih.T,                       # (d_in, 4H)
            "w_hh_t": w_hh.T,                       # (H, 4H)
            "bias": (b_ih + b_hh)[None, :],         # (1, 4H)
        })

    def linear(key, fan_in, fan_out):
        k1, k2 = jax.random.split(key)
        s = 1.0 / jnp.sqrt(fan_in)
        w = jax.random.uniform(k1, (fan_in, fan_out), jnp.float32, -s, s)  # stored transposed
        b = jax.random.uniform(k2, (1, fan_out), jnp.float32, -s, s)
        return w, b

    key, k1, k2, k3 = jax.random.split(key, 4)
    params["w1"], params["b1"] = linear(k1, hidden_dim, 128)
    params["w2"], params["b2"] = linear(k2, 128, 32)
    params["w3"], params["b3"] = linear(k3, 32, output_dim)
    params["g1"] = jnp.ones((1, 128), jnp.float32)
    params["be1"] = jnp.zeros((1, 128), jnp.float32)
    params["g2"] = jnp.ones((1, 32), jnp.float32)
    params["be2"] = jnp.zeros((1, 32), jnp.float32)
    return params


# ----------------------------------------------------------------------------
# Pure-JAX reference (same math, no Pallas) for a correctness check.
# ----------------------------------------------------------------------------
def _reference_forward(inp_btd, params):
    x = inp_btd.astype(jnp.float32)
    B, T, _ = x.shape
    for lp in params["lstm"]:
        H = lp["w_hh_t"].shape[0]
        h = jnp.zeros((B, H), jnp.float32)
        c = jnp.zeros((B, H), jnp.float32)
        outs = []
        for t in range(T):
            g = x[:, t, :] @ lp["w_ih_t"] + h @ lp["w_hh_t"] + lp["bias"]
            i = jax.nn.sigmoid(g[:, 0:H])
            f = jax.nn.sigmoid(g[:, H:2 * H])
            gg = jnp.tanh(g[:, 2 * H:3 * H])
            o = jax.nn.sigmoid(g[:, 3 * H:4 * H])
            c = f * c + i * gg
            h = o * jnp.tanh(c)
            outs.append(h)
        x = jnp.stack(outs, axis=1)
    y = x[:, -1, :]

    def bn_relu(v, gamma, beta):
        mu = v.mean(0, keepdims=True)
        var = ((v - mu) ** 2).mean(0, keepdims=True)
        return jnp.maximum((v - mu) * jax.lax.rsqrt(var + _BN_EPS) * gamma + beta, 0.0)

    y = bn_relu(y @ params["w1"] + params["b1"], params["g1"], params["be1"])
    y = bn_relu(y @ params["w2"] + params["b2"], params["g2"], params["be2"])
    return y @ params["w3"] + params["b3"]


if __name__ == "__main__":
    # Small, forward-consistent shapes.
    B, T = 2, 8
    input_dim, hidden_dim, output_dim, num_layers = 16, 32, 4, 2

    key = jax.random.PRNGKey(0)
    key, pkey, xkey = jax.random.split(key, 3)
    params = init_params(pkey, input_dim, hidden_dim, output_dim, num_layers)
    inp = jax.random.normal(xkey, (B, T, input_dim), jnp.float32)

    out = lstm_model_forward(inp, params, num_layers=num_layers, hidden_dim=hidden_dim)
    jax.block_until_ready(out)
    assert out.shape == (B, output_dim), out.shape

    ref = _reference_forward(inp, params)
    assert jnp.allclose(out, ref, rtol=1e-3, atol=1e-3), (out, ref)

    print("KERNEL_OK")
</pallas_src>

<mosaic_0001>
module attributes {stable_mosaic.version = 11 : i64} {
  func.func @_fused_lstm_head_kernel(%arg0: memref<2x8x16xf32, #tpu.memory_space<vmem>>, %arg1: memref<16x128xf32, #tpu.memory_space<vmem>>, %arg2: memref<32x128xf32, #tpu.memory_space<vmem>>, %arg3: memref<1x128xf32, #tpu.memory_space<vmem>>, %arg4: memref<32x128xf32, #tpu.memory_space<vmem>>, %arg5: memref<32x128xf32, #tpu.memory_space<vmem>>, %arg6: memref<1x128xf32, #tpu.memory_space<vmem>>, %arg7: memref<32x128xf32, #tpu.memory_space<vmem>>, %arg8: memref<1x128xf32, #tpu.memory_space<vmem>>, %arg9: memref<1x128xf32, #tpu.memory_space<vmem>>, %arg10: memref<1x128xf32, #tpu.memory_space<vmem>>, %arg11: memref<128x32xf32, #tpu.memory_space<vmem>>, %arg12: memref<1x32xf32, #tpu.memory_space<vmem>>, %arg13: memref<1x32xf32, #tpu.memory_space<vmem>>, %arg14: memref<1x32xf32, #tpu.memory_space<vmem>>, %arg15: memref<32x4xf32, #tpu.memory_space<vmem>>, %arg16: memref<1x4xf32, #tpu.memory_space<vmem>>, %arg17: memref<2x4xf32, #tpu.memory_space<vmem>>) attributes {dimension_semantics = [], scalar_prefetch = 0 : i64, scratch_operands = 0 : i64, tpu.core_type = #tpu.core_type<tc>} {
    %0 = tpu.iota {dimensions = array<i32: 1>} : vector<2x128xi32>
    %c64_i32 = arith.constant 64 : i32
    %1 = vector.broadcast %c64_i32 : i32 to vector<2x128xi32>
    %2 = arith.cmpi sge, %0, %1 : vector<2x128xi32>
    %c96_i32 = arith.constant 96 : i32
    %3 = vector.broadcast %c96_i32 : i32 to vector<2x128xi32>
    %4 = arith.cmpi slt, %0, %3 : vector<2x128xi32>
    %5 = arith.andi %2, %4 : vector<2x128xi1>
    %c0 = arith.constant 0 : index
    %c0_0 = arith.constant 0 : index
    %c0_1 = arith.constant 0 : index
    %6 = vector.load %arg0[%c0, %c0_0, %c0_1] : memref<2x8x16xf32, #tpu.memory_space<vmem>>, vector<2x8x16xf32>
    %c0_2 = arith.constant 0 : index
    %c0_3 = arith.constant 0 : index
    %7 = vector.load %arg1[%c0_2, %c0_3] : memref<16x128xf32, #tpu.memory_space<vmem>>, vector<16x128xf32>
    %c0_4 = arith.constant 0 : index
    %c0_5 = arith.constant 0 : index
    %8 = vector.load %arg2[%c0_4, %c0_5] : memref<32x128xf32, #tpu.memory_space<vmem>>, vector<32x128xf32>
    %c0_6 = arith.constant 0 : index
    %c0_7 = arith.constant 0 : index
    %9 = vector.load %arg3[%c0_6, %c0_7] : memref<1x128xf32, #tpu.memory_space<vmem>>, vector<1x128xf32>
    %10 = vector.shape_cast %6 : vector<2x8x16xf32> to vector<16x16xf32>
    %cst = arith.constant dense<0.000000e+00> : vector<16x128xf32>
    %11 = tpu.matmul %10, %7, %cst {dimension_numbers = #tpu.dot_dimension_numbers<[1], [0], [0], [1], [0, 0, 1, 1], [], []>} : vector<16x16xf32>, vector<16x128xf32>, vector<16x128xf32> -> vector<16x128xf32>
    %12 = vector.broadcast %9 : vector<1x128xf32> to vector<16x128xf32>
    %13 = arith.addf %11, %12 : vector<16x128xf32>
    %14 = vector.shape_cast %13 : vector<16x128xf32> to vector<2x8x128xf32>
    %cst_8 = arith.constant 0.000000e+00 : f32
    %15 = vector.broadcast %cst_8 : f32 to vector<2x32xf32>
    %cst_9 = arith.constant 0.000000e+00 : f32
    %16 = vector.broadcast %cst_9 : f32 to vector<2x32xf32>
    %17 = vector.extract_strided_slice %14 {offsets = [0, 0, 0], sizes = [2, 1, 128], strides = [1, 1, 1]} : vector<2x8x128xf32> to vector<2x1x128xf32>
    %18 = vector.shape_cast %17 : vector<2x1x128xf32> to vector<2x128xf32>
    %cst_10 = arith.constant dense<0.000000e+00> : vector<2x128xf32>
    %19 = tpu.matmul %15, %8, %cst_10 {dimension_numbers = #tpu.dot_dimension_numbers<[1], [0], [0], [1], [0, 0, 1, 1], [], []>} : vector<2x32xf32>, vector<32x128xf32>, vector<2x128xf32> -> vector<2x128xf32>
    %20 = arith.addf %18, %19 : vector<2x128xf32>
    %21 = math.tanh %20 : vector<2x128xf32>
    %22 = arith.negf %20 : vector<2x128xf32>
    %23 = math.exp %22 : vector<2x128xf32>
    %cst_11 = arith.constant 1.000000e+00 : f32
    %24 = vector.broadcast %cst_11 : f32 to vector<2x128xf32>
    %25 = arith.addf %24, %23 : vector<2x128xf32>
    %26 = arith.divf %24, %25 : vector<2x128xf32>
    %27 = arith.select %5, %21, %26 : vector<2x128xi1>, vector<2x128xf32>
    %28 = vector.extract_strided_slice %27 {offsets = [0, 0], sizes = [2, 32], strides = [1, 1]} : vector<2x128xf32> to vector<2x32xf32>
    %29 = vector.extract_strided_slice %27 {offsets = [0, 32], sizes = [2, 32], strides = [1, 1]} : vector<2x128xf32> to vector<2x32xf32>
    %30 = vector.extract_strided_slice %27 {offsets = [0, 64], sizes = [2, 32], strides = [1, 1]} : vector<2x128xf32> to vector<2x32xf32>
    %31 = vector.extract_strided_slice %27 {offsets = [0, 96], sizes = [2, 32], strides = [1, 1]} : vector<2x128xf32> to vector<2x32xf32>
    %32 = arith.mulf %29, %16 : vector<2x32xf32>
    %33 = arith.mulf %28, %30 : vector<2x32xf32>
    %34 = arith.addf %32, %33 : vector<2x32xf32>
    %35 = math.tanh %34 : vector<2x32xf32>
    %36 = arith.mulf %31, %35 : vector<2x32xf32>
    %37 = vector.extract_strided_slice %14 {offsets = [0, 1, 0], sizes = [2, 1, 128], strides = [1, 1, 1]} : vector<2x8x128xf32> to vector<2x1x128xf32>
    %38 = vector.shape_cast %37 : vector<2x1x128xf32> to vector<2x128xf32>
    %cst_12 = arith.constant dense<0.000000e+00> : vector<2x128xf32>
    %39 = tpu.matmul %36, %8, %cst_12 {dimension_numbers = #tpu.dot_dimension_numbers<[1], [0], [0], [1], [0, 0, 1, 1], [], []>} : vector<2x32xf32>, vector<32x128xf32>, vector<2x128xf32> -> vector<2x128xf32>
    %40 = arith.addf %38, %39 : vector<2x128xf32>
    %41 = math.tanh %40 : vector<2x128xf32>
    %42 = arith.negf %40 : vector<2x128xf32>
    %43 = math.exp %42 : vector<2x128xf32>
    %cst_13 = arith.constant 1.000000e+00 : f32
    %44 = vector.broadcast %cst_13 : f32 to vector<2x128xf32>
    %45 = arith.addf %44, %43 : vector<2x128xf32>
    %46 = arith.divf %44, %45 : vector<2x128xf32>
    %47 = arith.select %5, %41, %46 : vector<2x128xi1>, vector<2x128xf32>
    %48 = vector.extract_strided_slice %47 {offsets = [0, 0], sizes = [2, 32], strides = [1, 1]} : vector<2x128xf32> to vector<2x32xf32>
    %49 = vector.extract_strided_slice %47 {offsets = [0, 32], sizes = [2, 32], strides = [1, 1]} : vector<2x128xf32> to vector<2x32xf32>
    %50 = vector.extract_strided_slice %47 {offsets = [0, 64], sizes = [2, 32], strides = [1, 1]} : vector<2x128xf32> to vector<2x32xf32>
    %51 = vector.extract_strided_slice %47 {offsets = [0, 96], sizes = [2, 32], strides = [1, 1]} : vector<2x128xf32> to vector<2x32xf32>
    %52 = arith.mulf %49, %34 : vector<2x32xf32>
    %53 = arith.mulf %48, %50 : vector<2x32xf32>
    %54 = arith.addf %52, %53 : vector<2x32xf32>
    %55 = math.tanh %54 : vector<2x32xf32>
    %56 = arith.mulf %51, %55 : vector<2x32xf32>
    %57 = vector.extract_strided_slice %14 {offsets = [0, 2, 0], sizes = [2, 1, 128], strides = [1, 1, 1]} : vector<2x8x128xf32> to vector<2x1x128xf32>
    %58 = vector.shape_cast %57 : vector<2x1x128xf32> to vector<2x128xf32>
    %cst_14 = arith.constant dense<0.000000e+00> : vector<2x128xf32>
    %59 = tpu.matmul %56, %8, %cst_14 {dimension_numbers = #tpu.dot_dimension_numbers<[1], [0], [0], [1], [0, 0, 1, 1], [], []>} : vector<2x32xf32>, vector<32x128xf32>, vector<2x128xf32> -> vector<2x128xf32>
    %60 = arith.addf %58, %59 : vector<2x128xf32>
    %61 = math.tanh %60 : vector<2x128xf32>
    %62 = arith.negf %60 : vector<2x128xf32>
    %63 = math.exp %62 : vector<2x128xf32>
    %cst_15 = arith.constant 1.000000e+00 : f32
    %64 = vector.broadcast %cst_15 : f32 to vector<2x128xf32>
    %65 = arith.addf %64, %63 : vector<2x128xf32>
    %66 = arith.divf %64, %65 : vector<2x128xf32>
    %67 = arith.select %5, %61, %66 : vector<2x128xi1>, vector<2x128xf32>
    %68 = vector.extract_strided_slice %67 {offsets = [0, 0], sizes = [2, 32], strides = [1, 1]} : vector<2x128xf32> to vector<2x32xf32>
    %69 = vector.extract_strided_slice %67 {offsets = [0, 32], sizes = [2, 32], strides = [1, 1]} : vector<2x128xf32> to vector<2x32xf32>
    %70 = vector.extract_strided_slice %67 {offsets = [0, 64], sizes = [2, 32], strides = [1, 1]} : vector<2x128xf32> to vector<2x32xf32>
    %71 = vector.extract_strided_slice %67 {offsets = [0, 96], sizes = [2, 32], strides = [1, 1]} : vector<2x128xf32> to vector<2x32xf32>
    %72 = arith.mulf %69, %54 : vector<2x32xf32>
    %73 = arith.mulf %68, %70 : vector<2x32xf32>
    %74 = arith.addf %72, %73 : vector<2x32xf32>
    %75 = math.tanh %74 : vector<2x32xf32>
    %76 = arith.mulf %71, %75 : vector<2x32xf32>
    %77 = vector.extract_strided_slice %14 {offsets = [0, 3, 0], sizes = [2, 1, 128], strides = [1, 1, 1]} : vector<2x8x128xf32> to vector<2x1x128xf32>
    %78 = vector.shape_cast %77 : vector<2x1x128xf32> to vector<2x128xf32>
    %cst_16 = arith.constant dense<0.000000e+00> : vector<2x128xf32>
    %79 = tpu.matmul %76, %8, %cst_16 {dimension_numbers = #tpu.dot_dimension_numbers<[1], [0], [0], [1], [0, 0, 1, 1], [], []>} : vector<2x32xf32>, vector<32x128xf32>, vector<2x128xf32> -> vector<2x128xf32>
    %80 = arith.addf %78, %79 : vector<2x128xf32>
    %81 = math.tanh %80 : vector<2x128xf32>
    %82 = arith.negf %80 : vector<2x128xf32>
    %83 = math.exp %82 : vector<2x128xf32>
    %cst_17 = arith.constant 1.000000e+00 : f32
    %84 = vector.broadcast %cst_17 : f32 to vector<2x128xf32>
    %85 = arith.addf %84, %83 : vector<2x128xf32>
    %86 = arith.divf %84, %85 : vector<2x128xf32>
    %87 = arith.select %5, %81, %86 : vector<2x128xi1>, vector<2x128xf32>
    %88 = vector.extract_strided_slice %87 {offsets = [0, 0], sizes = [2, 32], strides = [1, 1]} : vector<2x128xf32> to vector<2x32xf32>
    %89 = vector.extract_strided_slice %87 {offsets = [0, 32], sizes = [2, 32], strides = [1, 1]} : vector<2x128xf32> to vector<2x32xf32>
    %90 = vector.extract_strided_slice %87 {offsets = [0, 64], sizes = [2, 32], strides = [1, 1]} : vector<2x128xf32> to vector<2x32xf32>
    %91 = vector.extract_strided_slice %87 {offsets = [0, 96], sizes = [2, 32], strides = [1, 1]} : vector<2x128xf32> to vector<2x32xf32>
    %92 = arith.mulf %89, %74 : vector<2x32xf32>
    %93 = arith.mulf %88, %90 : vector<2x32xf32>
    %94 = arith.addf %92, %93 : vector<2x32xf32>
    %95 = math.tanh %94 : vector<2x32xf32>
    %96 = arith.mulf %91, %95 : vector<2x32xf32>
    %97 = vector.extract_strided_slice %14 {offsets = [0, 4, 0], sizes = [2, 1, 128], strides = [1, 1, 1]} : vector<2x8x128xf32> to vector<2x1x128xf32>
    %98 = vector.shape_cast %97 : vector<2x1x128xf32> to vector<2x128xf32>
    %cst_18 = arith.constant dense<0.000000e+00> : vector<2x128xf32>
    %99 = tpu.matmul %96, %8, %cst_18 {dimension_numbers = #tpu.dot_dimension_numbers<[1], [0], [0], [1], [0, 0, 1, 1], [], []>} : vector<2x32xf32>, vector<32x128xf32>, vector<2x128xf32> -> vector<2x128xf32>
    %100 = arith.addf %98, %99 : vector<2x128xf32>
    %101 = math.tanh %100 : vector<2x128xf32>
    %102 = arith.negf %100 : vector<2x128xf32>
    %103 = math.exp %102 : vector<2x128xf32>
    %cst_19 = arith.constant 1.000000e+00 : f32
    %104 = vector.broadcast %cst_19 : f32 to vector<2x128xf32>
    %105 = arith.addf %104, %103 : vector<2x128xf32>
    %106 = arith.divf %104, %105 : vector<2x128xf32>
    %107 = arith.select %5, %101, %106 : vector<2x128xi1>, vector<2x128xf32>
    %108 = vector.extract_strided_slice %107 {offsets = [0, 0], sizes = [2, 32], strides = [1, 1]} : vector<2x128xf32> to vector<2x32xf32>
    %109 = vector.extract_strided_slice %107 {offsets = [0, 32], sizes = [2, 32], strides = [1, 1]} : vector<2x128xf32> to vector<2x32xf32>
    %110 = vector.extract_strided_slice %107 {offsets = [0, 64], sizes = [2, 32], strides = [1, 1]} : vector<2x128xf32> to vector<2x32xf32>
    %111 = vector.extract_strided_slice %107 {offsets = [0, 96], sizes = [2, 32], strides = [1, 1]} : vector<2x128xf32> to vector<2x32xf32>
    %112 = arith.mulf %109, %94 : vector<2x32xf32>
    %113 = arith.mulf %108, %110 : vector<2x32xf32>
    %114 = arith.addf %112, %113 : vector<2x32xf32>
    %115 = math.tanh %114 : vector<2x32xf32>
    %116 = arith.mulf %111, %115 : vector<2x32xf32>
    %117 = vector.extract_strided_slice %14 {offsets = [0, 5, 0], sizes = [2, 1, 128], strides = [1, 1, 1]} : vector<2x8x128xf32> to vector<2x1x128xf32>
    %118 = vector.shape_cast %117 : vector<2x1x128xf32> to vector<2x128xf32>
    %cst_20 = arith.constant dense<0.000000e+00> : vector<2x128xf32>
    %119 = tpu.matmul %116, %8, %cst_20 {dimension_numbers = #tpu.dot_dimension_numbers<[1], [0], [0], [1], [0, 0, 1, 1], [], []>} : vector<2x32xf32>, vector<32x128xf32>, vector<2x128xf32> -> vector<2x128xf32>
    %120 = arith.addf %118, %119 : vector<2x128xf32>
    %121 = math.tanh %120 : vector<2x128xf32>
    %122 = arith.negf %120 : vector<2x128xf32>
    %123 = math.exp %122 : vector<2x128xf32>
    %cst_21 = arith.constant 1.000000e+00 : f32
    %124 = vector.broadcast %cst_21 : f32 to vector<2x128xf32>
    %125 = arith.addf %124, %123 : vector<2x128xf32>
    %126 = arith.divf %124, %125 : vector<2x128xf32>
    %127 = arith.select %5, %121, %126 : vector<2x128xi1>, vector<2x128xf32>
    %128 = vector.extract_strided_slice %127 {offsets = [0, 0], sizes = [2, 32], strides = [1, 1]} : vector<2x128xf32> to vector<2x32xf32>
    %129 = vector.extract_strided_slice %127 {offsets = [0, 32], sizes = [2, 32], strides = [1, 1]} : vector<2x128xf32> to vector<2x32xf32>
    %130 = vector.extract_strided_slice %127 {offsets = [0, 64], sizes = [2, 32], strides = [1, 1]} : vector<2x128xf32> to vector<2x32xf32>
    %131 = vector.extract_strided_slice %127 {offsets = [0, 96], sizes = [2, 32], strides = [1, 1]} : vector<2x128xf32> to vector<2x32xf32>
    %132 = arith.mulf %129, %114 : vector<2x32xf32>
    %133 = arith.mulf %128, %130 : vector<2x32xf32>
    %134 = arith.addf %132, %133 : vector<2x32xf32>
    %135 = math.tanh %134 : vector<2x32xf32>
    %136 = arith.mulf %131, %135 : vector<2x32xf32>
    %137 = vector.extract_strided_slice %14 {offsets = [0, 6, 0], sizes = [2, 1, 128], strides = [1, 1, 1]} : vector<2x8x128xf32> to vector<2x1x128xf32>
    %138 = vector.shape_cast %137 : vector<2x1x128xf32> to vector<2x128xf32>
    %cst_22 = arith.constant dense<0.000000e+00> : vector<2x128xf32>
    %139 = tpu.matmul %136, %8, %cst_22 {dimension_numbers = #tpu.dot_dimension_numbers<[1], [0], [0], [1], [0, 0, 1, 1], [], []>} : vector<2x32xf32>, vector<32x128xf32>, vector<2x128xf32> -> vector<2x128xf32>
    %140 = arith.addf %138, %139 : vector<2x128xf32>
    %141 = math.tanh %140 : vector<2x128xf32>
    %142 = arith.negf %140 : vector<2x128xf32>
    %143 = math.exp %142 : vector<2x128xf32>
    %cst_23 = arith.constant 1.000000e+00 : f32
    %144 = vector.broadcast %cst_23 : f32 to vector<2x128xf32>
    %145 = arith.addf %144, %143 : vector<2x128xf32>
    %146 = arith.divf %144, %145 : vector<2x128xf32>
    %147 = arith.select %5, %141, %146 : vector<2x128xi1>, vector<2x128xf32>
    %148 = vector.extract_strided_slice %147 {offsets = [0, 0], sizes = [2, 32], strides = [1, 1]} : vector<2x128xf32> to vector<2x32xf32>
    %149 = vector.extract_strided_slice %147 {offsets = [0, 32], sizes = [2, 32], strides = [1, 1]} : vector<2x128xf32> to vector<2x32xf32>
    %150 = vector.extract_strided_slice %147 {offsets = [0, 64], sizes = [2, 32], strides = [1, 1]} : vector<2x128xf32> to vector<2x32xf32>
    %151 = vector.extract_strided_slice %147 {offsets = [0, 96], sizes = [2, 32], strides = [1, 1]} : vector<2x128xf32> to vector<2x32xf32>
    %152 = arith.mulf %149, %134 : vector<2x32xf32>
    %153 = arith.mulf %148, %150 : vector<2x32xf32>
    %154 = arith.addf %152, %153 : vector<2x32xf32>
    %155 = math.tanh %154 : vector<2x32xf32>
    %156 = arith.mulf %151, %155 : vector<2x32xf32>
    %157 = vector.extract_strided_slice %14 {offsets = [0, 7, 0], sizes = [2, 1, 128], strides = [1, 1, 1]} : vector<2x8x128xf32> to vector<2x1x128xf32>
    %158 = vector.shape_cast %157 : vector<2x1x128xf32> to vector<2x128xf32>
    %cst_24 = arith.constant dense<0.000000e+00> : vector<2x128xf32>
    %159 = tpu.matmul %156, %8, %cst_24 {dimension_numbers = #tpu.dot_dimension_numbers<[1], [0], [0], [1], [0, 0, 1, 1], [], []>} : vector<2x32xf32>, vector<32x128xf32>, vector<2x128xf32> -> vector<2x128xf32>
    %160 = arith.addf %158, %159 : vector<2x128xf32>
    %161 = math.tanh %160 : vector<2x128xf32>
    %162 = arith.negf %160 : vector<2x128xf32>
    %163 = math.exp %162 : vector<2x128xf32>
    %cst_25 = arith.constant 1.000000e+00 : f32
    %164 = vector.broadcast %cst_25 : f32 to vector<2x128xf32>
    %165 = arith.addf %164, %163 : vector<2x128xf32>
    %166 = arith.divf %164, %165 : vector<2x128xf32>
    %167 = arith.select %5, %161, %166 : vector<2x128xi1>, vector<2x128xf32>
    %168 = vector.extract_strided_slice %167 {offsets = [0, 0], sizes = [2, 32], strides = [1, 1]} : vector<2x128xf32> to vector<2x32xf32>
    %169 = vector.extract_strided_slice %167 {offsets = [0, 32], sizes = [2, 32], strides = [1, 1]} : vector<2x128xf32> to vector<2x32xf32>
    %170 = vector.extract_strided_slice %167 {offsets = [0, 64], sizes = [2, 32], strides = [1, 1]} : vector<2x128xf32> to vector<2x32xf32>
    %171 = vector.extract_strided_slice %167 {offsets = [0, 96], sizes = [2, 32], strides = [1, 1]} : vector<2x128xf32> to vector<2x32xf32>
    %172 = arith.mulf %169, %154 : vector<2x32xf32>
    %173 = arith.mulf %168, %170 : vector<2x32xf32>
    %174 = arith.addf %172, %173 : vector<2x32xf32>
    %175 = math.tanh %174 : vector<2x32xf32>
    %176 = arith.mulf %171, %175 : vector<2x32xf32>
    %177 = vector.shape_cast %36 : vector<2x32xf32> to vector<2x1x32xf32>
    %178 = vector.shape_cast %56 : vector<2x32xf32> to vector<2x1x32xf32>
    %179 = vector.shape_cast %76 : vector<2x32xf32> to vector<2x1x32xf32>
    %180 = vector.shape_cast %96 : vector<2x32xf32> to vector<2x1x32xf32>
    %181 = vector.shape_cast %116 : vector<2x32xf32> to vector<2x1x32xf32>
    %182 = vector.shape_cast %136 : vector<2x32xf32> to vector<2x1x32xf32>
    %183 = vector.shape_cast %156 : vector<2x32xf32> to vector<2x1x32xf32>
    %184 = vector.shape_cast %176 : vector<2x32xf32> to vector<2x1x32xf32>
    %185 = tpu.concatenate %177, %178, %179, %180, %181, %182, %183, %184 in 1 : vector<2x1x32xf32>, vector<2x1x32xf32>, vector<2x1x32xf32>, vector<2x1x32xf32>, vector<2x1x32xf32>, vector<2x1x32xf32>, vector<2x1x32xf32>, vector<2x1x32xf32> -> vector<2x8x32xf32>
    %c0_26 = arith.constant 0 : index
    %c0_27 = arith.constant 0 : index
    %186 = vector.load %arg4[%c0_26, %c0_27] : memref<32x128xf32, #tpu.memory_space<vmem>>, vector<32x128xf32>
    %c0_28 = arith.constant 0 : index
    %c0_29 = arith.constant 0 : index
    %187 = vector.load %arg5[%c0_28, %c0_29] : memref<32x128xf32, #tpu.memory_space<vmem>>, vector<32x128xf32>
    %c0_30 = arith.constant 0 : index
    %c0_31 = arith.constant 0 : index
    %188 = vector.load %arg6[%c0_30, %c0_31] : memref<1x128xf32, #tpu.memory_space<vmem>>, vector<1x128xf32>
    %189 = vector.shape_cast %185 : vector<2x8x32xf32> to vector<16x32xf32>
    %cst_32 = arith.constant dense<0.000000e+00> : vector<16x128xf32>
    %190 = tpu.matmul %189, %186, %cst_32 {dimension_numbers = #tpu.dot_dimension_numbers<[1], [0], [0], [1], [0, 0, 1, 1], [], []>} : vector<16x32xf32>, vector<32x128xf32>, vector<16x128xf32> -> vector<16x128xf32>
    %191 = vector.broadcast %188 : vector<1x128xf32> to vector<16x128xf32>
    %192 = arith.addf %190, %191 : vector<16x128xf32>
    %193 = vector.shape_cast %192 : vector<16x128xf32> to vector<2x8x128xf32>
    %cst_33 = arith.constant 0.000000e+00 : f32
    %194 = vector.broadcast %cst_33 : f32 to vector<2x32xf32>
    %cst_34 = arith.constant 0.000000e+00 : f32
    %195 = vector.broadcast %cst_34 : f32 to vector<2x32xf32>
    %196 = vector.extract_strided_slice %193 {offsets = [0, 0, 0], sizes = [2, 1, 128], strides = [1, 1, 1]} : vector<2x8x128xf32> to vector<2x1x128xf32>
    %197 = vector.shape_cast %196 : vector<2x1x128xf32> to vector<2x128xf32>
    %cst_35 = arith.constant dense<0.000000e+00> : vector<2x128xf32>
    %198 = tpu.matmul %194, %187, %cst_35 {dimension_numbers = #tpu.dot_dimension_numbers<[1], [0], [0], [1], [0, 0, 1, 1], [], []>} : vector<2x32xf32>, vector<32x128xf32>, vector<2x128xf32> -> vector<2x128xf32>
    %199 = arith.addf %197, %198 : vector<2x128xf32>
    %200 = math.tanh %199 : vector<2x128xf32>
    %201 = arith.negf %199 : vector<2x128xf32>
    %202 = math.exp %201 : vector<2x128xf32>
    %cst_36 = arith.constant 1.000000e+00 : f32
    %203 = vector.broadcast %cst_36 : f32 to vector<2x128xf32>
    %204 = arith.addf %203, %202 : vector<2x128xf32>
    %205 = arith.divf %203, %204 : vector<2x128xf32>
    %206 = arith.select %5, %200, %205 : vector<2x128xi1>, vector<2x128xf32>
    %207 = vector.extract_strided_slice %206 {offsets = [0, 0], sizes = [2, 32], strides = [1, 1]} : vector<2x128xf32> to vector<2x32xf32>
    %208 = vector.extract_strided_slice %206 {offsets = [0, 32], sizes = [2, 32], strides = [1, 1]} : vector<2x128xf32> to vector<2x32xf32>
    %209 = vector.extract_strided_slice %206 {offsets = [0, 64], sizes = [2, 32], strides = [1, 1]} : vector<2x128xf32> to vector<2x32xf32>
    %210 = vector.extract_strided_slice %206 {offsets = [0, 96], sizes = [2, 32], strides = [1, 1]} : vector<2x128xf32> to vector<2x32xf32>
    %211 = arith.mulf %208, %195 : vector<2x32xf32>
    %212 = arith.mulf %207, %209 : vector<2x32xf32>
    %213 = arith.addf %211, %212 : vector<2x32xf32>
    %214 = math.tanh %213 : vector<2x32xf32>
    %215 = arith.mulf %210, %214 : vector<2x32xf32>
    %216 = vector.extract_strided_slice %193 {offsets = [0, 1, 0], sizes = [2, 1, 128], strides = [1, 1, 1]} : vector<2x8x128xf32> to vector<2x1x128xf32>
    %217 = vector.shape_cast %216 : vector<2x1x128xf32> to vector<2x128xf32>
    %cst_37 = arith.constant dense<0.000000e+00> : vector<2x128xf32>
    %218 = tpu.matmul %215, %187, %cst_37 {dimension_numbers = #tpu.dot_dimension_numbers<[1], [0], [0], [1], [0, 0, 1, 1], [], []>} : vector<2x32xf32>, vector<32x128xf32>, vector<2x128xf32> -> vector<2x128xf32>
    %219 = arith.addf %217, %218 : vector<2x128xf32>
    %220 = math.tanh %219 : vector<2x128xf32>
    %221 = arith.negf %219 : vector<2x128xf32>
    %222 = math.exp %221 : vector<2x128xf32>
    %cst_38 = arith.constant 1.000000e+00 : f32
    %223 = vector.broadcast %cst_38 : f32 to vector<2x128xf32>
    %224 = arith.addf %223, %222 : vector<2x128xf32>
    %225 = arith.divf %223, %224 : vector<2x128xf32>
    %226 = arith.select %5, %220, %225 : vector<2x128xi1>, vector<2x128xf32>
    %227 = vector.extract_strided_slice %226 {offsets = [0, 0], sizes = [2, 32], strides = [1, 1]} : vector<2x128xf32> to vector<2x32xf32>
    %228 = vector.extract_strided_slice %226 {offsets = [0, 32], sizes = [2, 32], strides = [1, 1]} : vector<2x128xf32> to vector<2x32xf32>
    %229 = vector.extract_strided_slice %226 {offsets = [0, 64], sizes = [2, 32], strides = [1, 1]} : vector<2x128xf32> to vector<2x32xf32>
    %230 = vector.extract_strided_slice %226 {offsets = [0, 96], sizes = [2, 32], strides = [1, 1]} : vector<2x128xf32> to vector<2x32xf32>
    %231 = arith.mulf %228, %213 : vector<2x32xf32>
    %232 = arith.mulf %227, %229 : vector<2x32xf32>
    %233 = arith.addf %231, %232 : vector<2x32xf32>
    %234 = math.tanh %233 : vector<2x32xf32>
    %235 = arith.mulf %230, %234 : vector<2x32xf32>
    %236 = vector.extract_strided_slice %193 {offsets = [0, 2, 0], sizes = [2, 1, 128], strides = [1, 1, 1]} : vector<2x8x128xf32> to vector<2x1x128xf32>
    %237 = vector.shape_cast %236 : vector<2x1x128xf32> to vector<2x128xf32>
    %cst_39 = arith.constant dense<0.000000e+00> : vector<2x128xf32>
    %238 = tpu.matmul %235, %187, %cst_39 {dimension_numbers = #tpu.dot_dimension_numbers<[1], [0], [0], [1], [0, 0, 1, 1], [], []>} : vector<2x32xf32>, vector<32x128xf32>, vector<2x128xf32> -> vector<2x128xf32>
    %239 = arith.addf %237, %238 : vector<2x128xf32>
    %240 = math.tanh %239 : vector<2x128xf32>
    %241 = arith.negf %239 : vector<2x128xf32>
    %242 = math.exp %241 : vector<2x128xf32>
    %cst_40 = arith.constant 1.000000e+00 : f32
    %243 = vector.broadcast %cst_40 : f32 to vector<2x128xf32>
    %244 = arith.addf %243, %242 : vector<2x128xf32>
    %245 = arith.divf %243, %244 : vector<2x128xf32>
    %246 = arith.select %5, %240, %245 : vector<2x128xi1>, vector<2x128xf32>
    %247 = vector.extract_strided_slice %246 {offsets = [0, 0], sizes = [2, 32], strides = [1, 1]} : vector<2x128xf32> to vector<2x32xf32>
    %248 = vector.extract_strided_slice %246 {offsets = [0, 32], sizes = [2, 32], strides = [1, 1]} : vector<2x128xf32> to vector<2x32xf32>
    %249 = vector.extract_strided_slice %246 {offsets = [0, 64], sizes = [2, 32], strides = [1, 1]} : vector<2x128xf32> to vector<2x32xf32>
    %250 = vector.extract_strided_slice %246 {offsets = [0, 96], sizes = [2, 32], strides = [1, 1]} : vector<2x128xf32> to vector<2x32xf32>
    %251 = arith.mulf %248, %233 : vector<2x32xf32>
    %252 = arith.mulf %247, %249 : vector<2x32xf32>
    %253 = arith.addf %251, %252 : vector<2x32xf32>
    %254 = math.tanh %253 : vector<2x32xf32>
    %255 = arith.mulf %250, %254 : vector<2x32xf32>
    %256 = vector.extract_strided_slice %193 {offsets = [0, 3, 0], sizes = [2, 1, 128], strides = [1, 1, 1]} : vector<2x8x128xf32> to vector<2x1x128xf32>
    %257 = vector.shape_cast %256 : vector<2x1x128xf32> to vector<2x128xf32>
    %cst_41 = arith.constant dense<0.000000e+00> : vector<2x128xf32>
    %258 = tpu.matmul %255, %187, %cst_41 {dimension_numbers = #tpu.dot_dimension_numbers<[1], [0], [0], [1], [0, 0, 1, 1], [], []>} : vector<2x32xf32>, vector<32x128xf32>, vector<2x128xf32> -> vector<2x128xf32>
    %259 = arith.addf %257, %258 : vector<2x128xf32>
    %260 = math.tanh %259 : vector<2x128xf32>
    %261 = arith.negf %259 : vector<2x128xf32>
    %262 = math.exp %261 : vector<2x128xf32>
    %cst_42 = arith.constant 1.000000e+00 : f32
    %263 = vector.broadcast %cst_42 : f32 to vector<2x128xf32>
    %264 = arith.addf %263, %262 : vector<2x128xf32>
    %265 = arith.divf %263, %264 : vector<2x128xf32>
    %266 = arith.select %5, %260, %265 : vector<2x128xi1>, vector<2x128xf32>
    %267 = vector.extract_strided_slice %266 {offsets = [0, 0], sizes = [2, 32], strides = [1, 1]} : vector<2x128xf32> to vector<2x32xf32>
    %268 = vector.extract_strided_slice %266 {offsets = [0, 32], sizes = [2, 32], strides = [1, 1]} : vector<2x128xf32> to vector<2x32xf32>
    %269 = vector.extract_strided_slice %266 {offsets = [0, 64], sizes = [2, 32], strides = [1, 1]} : vector<2x128xf32> to vector<2x32xf32>
    %270 = vector.extract_strided_slice %266 {offsets = [0, 96], sizes = [2, 32], strides = [1, 1]} : vector<2x128xf32> to vector<2x32xf32>
    %271 = arith.mulf %268, %253 : vector<2x32xf32>
    %272 = arith.mulf %267, %269 : vector<2x32xf32>
    %273 = arith.addf %271, %272 : vector<2x32xf32>
    %274 = math.tanh %273 : vector<2x32xf32>
    %275 = arith.mulf %270, %274 : vector<2x32xf32>
    %276 = vector.extract_strided_slice %193 {offsets = [0, 4, 0], sizes = [2, 1, 128], strides = [1, 1, 1]} : vector<2x8x128xf32> to vector<2x1x128xf32>
    %277 = vector.shape_cast %276 : vector<2x1x128xf32> to vector<2x128xf32>
    %cst_43 = arith.constant dense<0.000000e+00> : vector<2x128xf32>
    %278 = tpu.matmul %275, %187, %cst_43 {dimension_numbers = #tpu.dot_dimension_numbers<[1], [0], [0], [1], [0, 0, 1, 1], [], []>} : vector<2x32xf32>, vector<32x128xf32>, vector<2x128xf32> -> vector<2x128xf32>
    %279 = arith.addf %277, %278 : vector<2x128xf32>
    %280 = math.tanh %279 : vector<2x128xf32>
    %281 = arith.negf %279 : vector<2x128xf32>
    %282 = math.exp %281 : vector<2x128xf32>
    %cst_44 = arith.constant 1.000000e+00 : f32
    %283 = vector.broadcast %cst_44 : f32 to vector<2x128xf32>
    %284 = arith.addf %283, %282 : vector<2x128xf32>
    %285 = arith.divf %283, %284 : vector<2x128xf32>
    %286 = arith.select %5, %280, %285 : vector<2x128xi1>, vector<2x128xf32>
    %287 = vector.extract_strided_slice %286 {offsets = [0, 0], sizes = [2, 32], strides = [1, 1]} : vector<2x128xf32> to vector<2x32xf32>
    %288 = vector.extract_strided_slice %286 {offsets = [0, 32], sizes = [2, 32], strides = [1, 1]} : vector<2x128xf32> to vector<2x32xf32>
    %289 = vector.extract_strided_slice %286 {offsets = [0, 64], sizes = [2, 32], strides = [1, 1]} : vector<2x128xf32> to vector<2x32xf32>
    %290 = vector.extract_strided_slice %286 {offsets = [0, 96], sizes = [2, 32], strides = [1, 1]} : vector<2x128xf32> to vector<2x32xf32>
    %291 = arith.mulf %288, %273 : vector<2x32xf32>
    %292 = arith.mulf %287, %289 : vector<2x32xf32>
    %293 = arith.addf %291, %292 : vector<2x32xf32>
    %294 = math.tanh %293 : vector<2x32xf32>
    %295 = arith.mulf %290, %294 : vector<2x32xf32>
    %296 = vector.extract_strided_slice %193 {offsets = [0, 5, 0], sizes = [2, 1, 128], strides = [1, 1, 1]} : vector<2x8x128xf32> to vector<2x1x128xf32>
    %297 = vector.shape_cast %296 : vector<2x1x128xf32> to vector<2x128xf32>
    %cst_45 = arith.constant dense<0.000000e+00> : vector<2x128xf32>
    %298 = tpu.matmul %295, %187, %cst_45 {dimension_numbers = #tpu.dot_dimension_numbers<[1], [0], [0], [1], [0, 0, 1, 1], [], []>} : vector<2x32xf32>, vector<32x128xf32>, vector<2x128xf32> -> vector<2x128xf32>
    %299 = arith.addf %297, %298 : vector<2x128xf32>
    %300 = math.tanh %299 : vector<2x128xf32>
    %301 = arith.negf %299 : vector<2x128xf32>
    %302 = math.exp %301 : vector<2x128xf32>
    %cst_46 = arith.constant 1.000000e+00 : f32
    %303 = vector.broadcast %cst_46 : f32 to vector<2x128xf32>
    %304 = arith.addf %303, %302 : vector<2x128xf32>
    %305 = arith.divf %303, %304 : vector<2x128xf32>
    %306 = arith.select %5, %300, %305 : vector<2x128xi1>, vector<2x128xf32>
    %307 = vector.extract_strided_slice %306 {offsets = [0, 0], sizes = [2, 32], strides = [1, 1]} : vector<2x128xf32> to vector<2x32xf32>
    %308 = vector.extract_strided_slice %306 {offsets = [0, 32], sizes = [2, 32], strides = [1, 1]} : vector<2x128xf32> to vector<2x32xf32>
    %309 = vector.extract_strided_slice %306 {offsets = [0, 64], sizes = [2, 32], strides = [1, 1]} : vector<2x128xf32> to vector<2x32xf32>
    %310 = vector.extract_strided_slice %306 {offsets = [0, 96], sizes = [2, 32], strides = [1, 1]} : vector<2x128xf32> to vector<2x32xf32>
    %311 = arith.mulf %308, %293 : vector<2x32xf32>
    %312 = arith.mulf %307, %309 : vector<2x32xf32>
    %313 = arith.addf %311, %312 : vector<2x32xf32>
    %314 = math.tanh %313 : vector<2x32xf32>
    %315 = arith.mulf %310, %314 : vector<2x32xf32>
    %316 = vector.extract_strided_slice %193 {offsets = [0, 6, 0], sizes = [2, 1, 128], strides = [1, 1, 1]} : vector<2x8x128xf32> to vector<2x1x128xf32>
    %317 = vector.shape_cast %316 : vector<2x1x128xf32> to vector<2x128xf32>
    %cst_47 = arith.constant dense<0.000000e+00> : vector<2x128xf32>
    %318 = tpu.matmul %315, %187, %cst_47 {dimension_numbers = #tpu.dot_dimension_numbers<[1], [0], [0], [1], [0, 0, 1, 1], [], []>} : vector<2x32xf32>, vector<32x128xf32>, vector<2x128xf32> -> vector<2x128xf32>
    %319 = arith.addf %317, %318 : vector<2x128xf32>
    %320 = math.tanh %319 : vector<2x128xf32>
    %321 = arith.negf %319 : vector<2x128xf32>
    %322 = math.exp %321 : vector<2x128xf32>
    %cst_48 = arith.constant 1.000000e+00 : f32
    %323 = vector.broadcast %cst_48 : f32 to vector<2x128xf32>
    %324 = arith.addf %323, %322 : vector<2x128xf32>
    %325 = arith.divf %323, %324 : vector<2x128xf32>
    %326 = arith.select %5, %320, %325 : vector<2x128xi1>, vector<2x128xf32>
    %327 = vector.extract_strided_slice %326 {offsets = [0, 0], sizes = [2, 32], strides = [1, 1]} : vector<2x128xf32> to vector<2x32xf32>
    %328 = vector.extract_strided_slice %326 {offsets = [0, 32], sizes = [2, 32], strides = [1, 1]} : vector<2x128xf32> to vector<2x32xf32>
    %329 = vector.extract_strided_slice %326 {offsets = [0, 64], sizes = [2, 32], strides = [1, 1]} : vector<2x128xf32> to vector<2x32xf32>
    %330 = vector.extract_strided_slice %326 {offsets = [0, 96], sizes = [2, 32], strides = [1, 1]} : vector<2x128xf32> to vector<2x32xf32>
    %331 = arith.mulf %328, %313 : vector<2x32xf32>
    %332 = arith.mulf %327, %329 : vector<2x32xf32>
    %333 = arith.addf %331, %332 : vector<2x32xf32>
    %334 = math.tanh %333 : vector<2x32xf32>
    %335 = arith.mulf %330, %334 : vector<2x32xf32>
    %336 = vector.extract_strided_slice %193 {offsets = [0, 7, 0], sizes = [2, 1, 128], strides = [1, 1, 1]} : vector<2x8x128xf32> to vector<2x1x128xf32>
    %337 = vector.shape_cast %336 : vector<2x1x128xf32> to vector<2x128xf32>
    %cst_49 = arith.constant dense<0.000000e+00> : vector<2x128xf32>
    %338 = tpu.matmul %335, %187, %cst_49 {dimension_numbers = #tpu.dot_dimension_numbers<[1], [0], [0], [1], [0, 0, 1, 1], [], []>} : vector<2x32xf32>, vector<32x128xf32>, vector<2x128xf32> -> vector<2x128xf32>
    %339 = arith.addf %337, %338 : vector<2x128xf32>
    %340 = math.tanh %339 : vector<2x128xf32>
    %341 = arith.negf %339 : vector<2x128xf32>
    %342 = math.exp %341 : vector<2x128xf32>
    %cst_50 = arith.constant 1.000000e+00 : f32
    %343 = vector.broadcast %cst_50 : f32 to vector<2x128xf32>
    %344 = arith.addf %343, %342 : vector<2x128xf32>
    %345 = arith.divf %343, %344 : vector<2x128xf32>
    %346 = arith.select %5, %340, %345 : vector<2x128xi1>, vector<2x128xf32>
    %347 = vector.extract_strided_slice %346 {offsets = [0, 0], sizes = [2, 32], strides = [1, 1]} : vector<2x128xf32> to vector<2x32xf32>
    %348 = vector.extract_strided_slice %346 {offsets = [0, 32], sizes = [2, 32], strides = [1, 1]} : vector<2x128xf32> to vector<2x32xf32>
    %349 = vector.extract_strided_slice %346 {offsets = [0, 64], sizes = [2, 32], strides = [1, 1]} : vector<2x128xf32> to vector<2x32xf32>
    %350 = vector.extract_strided_slice %346 {offsets = [0, 96], sizes = [2, 32], strides = [1, 1]} : vector<2x128xf32> to vector<2x32xf32>
    %351 = arith.mulf %348, %333 : vector<2x32xf32>
    %352 = arith.mulf %347, %349 : vector<2x32xf32>
    %353 = arith.addf %351, %352 : vector<2x32xf32>
    %354 = math.tanh %353 : vector<2x32xf32>
    %355 = arith.mulf %350, %354 : vector<2x32xf32>
    %c0_51 = arith.constant 0 : index
    %c0_52 = arith.constant 0 : index
    %356 = vector.load %arg7[%c0_51, %c0_52] : memref<32x128xf32, #tpu.memory_space<vmem>>, vector<32x128xf32>
    %cst_53 = arith.constant dense<0.000000e+00> : vector<2x128xf32>
    %357 = tpu.matmul %355, %356, %cst_53 {dimension_numbers = #tpu.dot_dimension_numbers<[1], [0], [0], [1], [0, 0, 1, 1], [], []>} : vector<2x32xf32>, vector<32x128xf32>, vector<2x128xf32> -> vector<2x128xf32>
    %c0_54 = arith.constant 0 : index
    %c0_55 = arith.constant 0 : index
    %358 = vector.load %arg8[%c0_54, %c0_55] : memref<1x128xf32, #tpu.memory_space<vmem>>, vector<1x128xf32>
    %359 = vector.broadcast %358 : vector<1x128xf32> to vector<2x128xf32>
    %360 = arith.addf %357, %359 : vector<2x128xf32>
    %c0_56 = arith.constant 0 : index
    %c0_57 = arith.constant 0 : index
    %361 = vector.load %arg9[%c0_56, %c0_57] : memref<1x128xf32, #tpu.memory_space<vmem>>, vector<1x128xf32>
    %c0_58 = arith.constant 0 : index
    %c0_59 = arith.constant 0 : index
    %362 = vector.load %arg10[%c0_58, %c0_59] : memref<1x128xf32, #tpu.memory_space<vmem>>, vector<1x128xf32>
    %cst_60 = arith.constant dense<0.000000e+00> : vector<128xf32>
    %363 = vector.multi_reduction <add>, %360, %cst_60 [0] : vector<2x128xf32> to vector<128xf32>
    %364 = vector.shape_cast %363 : vector<128xf32> to vector<1x128xf32>
    %cst_61 = arith.constant 2.000000e+00 : f32
    %365 = vector.broadcast %cst_61 : f32 to vector<1x128xf32>
    %366 = arith.divf %364, %365 : vector<1x128xf32>
    %367 = vector.broadcast %366 : vector<1x128xf32> to vector<2x128xf32>
    %368 = arith.subf %360, %367 : vector<2x128xf32>
    %369 = arith.mulf %368, %368 : vector<2x128xf32>
    %cst_62 = arith.constant dense<0.000000e+00> : vector<128xf32>
    %370 = vector.multi_reduction <add>, %369, %cst_62 [0] : vector<2x128xf32> to vector<128xf32>
    %371 = vector.shape_cast %370 : vector<128xf32> to vector<1x128xf32>
    %cst_63 = arith.constant 2.000000e+00 : f32
    %372 = vector.broadcast %cst_63 : f32 to vector<1x128xf32>
    %373 = arith.divf %371, %372 : vector<1x128xf32>
    %374 = vector.broadcast %366 : vector<1x128xf32> to vector<2x128xf32>
    %375 = arith.subf %360, %374 : vector<2x128xf32>
    %cst_64 = arith.constant 9.99999974E-6 : f32
    %376 = vector.broadcast %cst_64 : f32 to vector<1x128xf32>
    %377 = arith.addf %373, %376 : vector<1x128xf32>
    %378 = math.rsqrt %377 : vector<1x128xf32>
    %379 = vector.broadcast %378 : vector<1x128xf32> to vector<2x128xf32>
    %380 = arith.mulf %375, %379 : vector<2x128xf32>
    %381 = vector.broadcast %361 : vector<1x128xf32> to vector<2x128xf32>
    %382 = arith.mulf %380, %381 : vector<2x128xf32>
    %383 = vector.broadcast %362 : vector<1x128xf32> to vector<2x128xf32>
    %384 = arith.addf %382, %383 : vector<2x128xf32>
    %cst_65 = arith.constant 0.000000e+00 : f32
    %385 = vector.broadcast %cst_65 : f32 to vector<2x128xf32>
    %386 = arith.maximumf %384, %385 : vector<2x128xf32>
    %c0_66 = arith.constant 0 : index
    %c0_67 = arith.constant 0 : index
    %387 = vector.load %arg11[%c0_66, %c0_67] : memref<128x32xf32, #tpu.memory_space<vmem>>, vector<128x32xf32>
    %cst_68 = arith.constant dense<0.000000e+00> : vector<2x32xf32>
    %388 = tpu.matmul %386, %387, %cst_68 {dimension_numbers = #tpu.dot_dimension_numbers<[1], [0], [0], [1], [0, 0, 1, 1], [], []>} : vector<2x128xf32>, vector<128x32xf32>, vector<2x32xf32> -> vector<2x32xf32>
    %c0_69 = arith.constant 0 : index
    %c0_70 = arith.constant 0 : index
    %389 = vector.load %arg12[%c0_69, %c0_70] : memref<1x32xf32, #tpu.memory_space<vmem>>, vector<1x32xf32>
    %390 = vector.broadcast %389 : vector<1x32xf32> to vector<2x32xf32>
    %391 = arith.addf %388, %390 : vector<2x32xf32>
    %c0_71 = arith.constant 0 : index
    %c0_72 = arith.constant 0 : index
    %392 = vector.load %arg13[%c0_71, %c0_72] : memref<1x32xf32, #tpu.memory_space<vmem>>, vector<1x32xf32>
    %c0_73 = arith.constant 0 : index
    %c0_74 = arith.constant 0 : index
    %393 = vector.load %arg14[%c0_73, %c0_74] : memref<1x32xf32, #tpu.memory_space<vmem>>, vector<1x32xf32>
    %cst_75 = arith.constant dense<0.000000e+00> : vector<32xf32>
    %394 = vector.multi_reduction <add>, %391, %cst_75 [0] : vector<2x32xf32> to vector<32xf32>
    %395 = vector.shape_cast %394 : vector<32xf32> to vector<1x32xf32>
    %cst_76 = arith.constant 2.000000e+00 : f32
    %396 = vector.broadcast %cst_76 : f32 to vector<1x32xf32>
    %397 = arith.divf %395, %396 : vector<1x32xf32>
    %398 = vector.broadcast %397 : vector<1x32xf32> to vector<2x32xf32>
    %399 = arith.subf %391, %398 : vector<2x32xf32>
    %400 = arith.mulf %399, %399 : vector<2x32xf32>
    %cst_77 = arith.constant dense<0.000000e+00> : vector<32xf32>
    %401 = vector.multi_reduction <add>, %400, %cst_77 [0] : vector<2x32xf32> to vector<32xf32>
    %402 = vector.shape_cast %401 : vector<32xf32> to vector<1x32xf32>
    %cst_78 = arith.constant 2.000000e+00 : f32
    %403 = vector.broadcast %cst_78 : f32 to vector<1x32xf32>
    %404 = arith.divf %402, %403 : vector<1x32xf32>
    %405 = vector.broadcast %397 : vector<1x32xf32> to vector<2x32xf32>
    %406 = arith.subf %391, %405 : vector<2x32xf32>
    %cst_79 = arith.constant 9.99999974E-6 : f32
    %407 = vector.broadcast %cst_79 : f32 to vector<1x32xf32>
    %408 = arith.addf %404, %407 : vector<1x32xf32>
    %409 = math.rsqrt %408 : vector<1x32xf32>
    %410 = vector.broadcast %409 : vector<1x32xf32> to vector<2x32xf32>
    %411 = arith.mulf %406, %410 : vector<2x32xf32>
    %412 = vector.broadcast %392 : vector<1x32xf32> to vector<2x32xf32>
    %413 = arith.mulf %411, %412 : vector<2x32xf32>
    %414 = vector.broadcast %393 : vector<1x32xf32> to vector<2x32xf32>
    %415 = arith.addf %413, %414 : vector<2x32xf32>
    %cst_80 = arith.constant 0.000000e+00 : f32
    %416 = vector.broadcast %cst_80 : f32 to vector<2x32xf32>
    %417 = arith.maximumf %415, %416 : vector<2x32xf32>
    %c0_81 = arith.constant 0 : index
    %c0_82 = arith.constant 0 : index
    %418 = vector.load %arg15[%c0_81, %c0_82] : memref<32x4xf32, #tpu.memory_space<vmem>>, vector<32x4xf32>
    %cst_83 = arith.constant dense<0.000000e+00> : vector<2x4xf32>
    %419 = tpu.matmul %417, %418, %cst_83 {dimension_numbers = #tpu.dot_dimension_numbers<[1], [0], [0], [1], [0, 0, 1, 1], [], []>} : vector<2x32xf32>, vector<32x4xf32>, vector<2x4xf32> -> vector<2x4xf32>
    %c0_84 = arith.constant 0 : index
    %c0_85 = arith.constant 0 : index
    %420 = vector.load %arg16[%c0_84, %c0_85] : memref<1x4xf32, #tpu.memory_space<vmem>>, vector<1x4xf32>
    %421 = vector.broadcast %420 : vector<1x4xf32> to vector<2x4xf32>
    %422 = arith.addf %419, %421 : vector<2x4xf32>
    %c0_86 = arith.constant 0 : index
    %c0_87 = arith.constant 0 : index
    %423 = vector.load %arg17[%c0_86, %c0_87] : memref<2x4xf32, #tpu.memory_space<vmem>>, vector<2x4xf32>
    tpu.vector_store %arg17[%c0_86, %c0_87], %422 {strides = array<i32>} : memref<2x4xf32, #tpu.memory_space<vmem>>, vector<2x4xf32>,
    return
  }
}

</mosaic_0001>

<bundles_post_ra>
// kernel: lstm_model_forward.1
= control target key start
LH: loop header
LB: loop body
LE: loop exit
PB: predicated region body
PF: predicated region fallthrough
CT: control target
= control target key end

     0   :  { %s4342_s0 = inlined_call_operand.vmem [shape: f32[2,8,16], index: 0, kind: input, shape index: {}]   ;;  %s4343_s1 = inlined_call_operand.vmem [shape: f32[16,128], index: 1, kind: input, shape index: {}]   ;;  %s4344_s2 = inlined_call_operand.vmem [shape: f32[32,128], index: 2, kind: input, shape index: {}]   ;;  %s4345_s3 = inlined_call_operand.vmem [shape: f32[1,128], index: 3, kind: input, shape index: {}]   ;;  %s4346_s4 = inlined_call_operand.vmem [shape: f32[32,128], index: 4, kind: input, shape index: {}]   ;;  %s4347_s5 = inlined_call_operand.vmem [shape: f32[32,128], index: 5, kind: input, shape index: {}]   ;;  %s4348_s6 = inlined_call_operand.vmem [shape: f32[1,128], index: 6, kind: input, shape index: {}]   ;;  %s4349_s7 = inlined_call_operand.vmem [shape: f32[32,128], index: 7, kind: input, shape index: {}]   ;;  %s4350_s8 = inlined_call_operand.vmem [shape: f32[1,128], index: 8, kind: input, shape index: {}]   ;;  %s4351_s9 = inlined_call_operand.vmem [shape: f32[1,128], index: 9, kind: input, shape index: {}]   ;;  %s4352_s10 = inlined_call_operand.vmem [shape: f32[1,128], index: 10, kind: input, shape index: {}]   ;;  %s4353_s11 = inlined_call_operand.vmem [shape: f32[128,32], index: 11, kind: input, shape index: {}]   ;;  %s4354_s12 = inlined_call_operand.vmem [shape: f32[1,32], index: 12, kind: input, shape index: {}]   ;;  %s4355_s13 = inlined_call_operand.vmem [shape: f32[1,32], index: 13, kind: input, shape index: {}]   ;;  %s4356_s14 = inlined_call_operand.vmem [shape: f32[1,32], index: 14, kind: input, shape index: {}]   ;;  %s4357_s15 = inlined_call_operand.vmem [shape: f32[32,4], index: 15, kind: input, shape index: {}]   ;;  %s4358_s16 = inlined_call_operand.vmem [shape: f32[1,4], index: 16, kind: input, shape index: {}]   ;;  %s4359_s17 = inlined_call_operand.hbm [shape: f32[2,4], index: 17, kind: output, shape index: {}]  }
   0x1   :  { %4362 = sst [smem:[#allocation5_spill]] %s4342_s0 }
   0x2   :  { %4363 = sst [smem:[#allocation6_spill]] %s4343_s1 }
   0x3   :  { %s4364_s26 = sld [smem:[#allocation6_spill]]  ;;  %s4365_s30 = sld [smem:[#allocation5_spill]]  ;;  %vm77_vm0 = vcmask 130048   ;;  %v66_v4 = vld [vmem:[%s4344_s2] sm:$0xff]  ;;  %v67_v5 = vld [vmem:[%s4344_s2 + $0x8] sm:$0xff]  ;;  %v3717_v6 = vmov 0.0|0.0  }
   0x4   :  { %3330 = vmatprep.subr.bf16.mxu1 %v3717_v6  ;;  %v3831_v7 = vpack.c.bf16 %v67_v5, %v66_v4  ;;  %vm3718_vm1 = vmmov 0   ;;  %v3719_v8 = vmov 0.0  }
   0x5   :  { %3100 = vmatprep.mubr.msk.f32.mxu1 %vm3718_vm1, %v3719_v8 }
   0x9   :  { %v64_v0 = vld [vmem:[%s4364_s26] sm:$0xff]  ;;  %v65_v1 = vld [vmem:[%s4364_s26 + $0x8] sm:$0xff] }
   0xa   :  { %v62_v2 = vld [vmem:[%s4365_s30] sm:$0xff]  ;;  %v3314_v3 = vpack.c.bf16 %v65_v1, %v64_v0 }
   0xb   :  { %3067 = vmatprep.mubr.msk.f32.mxu0 %vm77_vm0, %v62_v2 }
   0xc   :  { %22 = vsyncpa [#allocation3], 0  ;;  %3315 = vmatprep.subr.bf16.mxu0 %v3314_v3  ;;  %v63_v9 = vld [vmem:[%s4365_s30 + $0x8] sm:$0xff]  ;;  %v68_v10 = vld [vmem:[%s4344_s2 + $0x10] sm:$0xff]  ;;  %3332 = vmatpush3.bf16.msra.mxu1 %v3831_v7  ;;  %v57_v29 = vlaneseq  ;;  %vm256_vm4 = vcmask 1041409   ;;  %s3721_s28 = smov 32  }
   0xd   :  { %3317 = vmatpush3.bf16.msra.mxu0 %v3314_v3  ;;  %v69_v11 = vld [vmem:[%s4344_s2 + $0x18] sm:$0xff]  ;;  %3333 = vmatprep.subr.bf16.mxu1 %v3717_v6  ;;  %v2885_v15 = vld [vmem:[%s4345_s3] ss:$0 sm:$0xff]  ;;  %s3720_s3 = smov 64   ;;  %v3722_v47 = vmov 1966171168  }
   0xe   :  { %3318 = vmatprep.subr.bf16.mxu0 %v3717_v6  ;;  %v3848_v12 = vpack.c.bf16 %v69_v11, %v68_v10  ;;  %v58_v30 = vand.u32 127, %v57_v29  ;;  %v1162_v48 = vunpack.c.l.s4 %v3722_v47  ;;  %v1165_v50 = vshrl.u32 %v57_v29, 7  ;;  %v2530_v35 = vld [vmem:[%s4349_s7 + $0x10] sm:$0xff]  ;;  %s3723_s25 = smov [#allocation2]  }
   0xf   :  { %vm159_vm6 = vcmask 261120   ;;  %vm1410_vm7 = vcmask 1040384   ;;  %vm1413_vm8 = vcmask 1041408   ;;  %vm1416_vm9 = vcmask 1042432   ;;  %s2877_s26 = sshll.u32 %s3723_s25, 4  ;;  %s2878_s26 = int_to_ptr.vmem [resolvable:$true] %s2877_s26 }
  0x10   :  { %3068 = vmatmul.mubr.msk.f32.vlgmr.msra.gmra.mrb[0].mxu0 %vm77_vm0, %v63_v9  ;;  %3335 = vmatpush3.bf16.msra.mxu1 %v3848_v12  ;;  %vm59_vm2 = vcmp.ge.s32.totalorder %v58_v30, 64  ;;  %vm60_vm3 = vcmp.lt.s32.totalorder %v58_v30, 96  ;;  %v1163_v49 = vunpack.c.0.s8 %v1162_v48  ;;  %v3907_v29 = vsub.s32 0, %v1165_v50  ;;  %p3698_p1 = scmp.lt.s32.totalorder %s2878_s26, %s2878_s26 }
  0x11   :  { %3320 = vmatpush3.bf16.msra.mxu0 %v3831_v7  ;;  %3078 = vmatprep.mubr.msk.f32.mxu0 %vm3718_vm1, %v3719_v8  ;;  %vm3874_vm5 = vmand %vm59_vm2, %vm60_vm3  ;;  %vm1419_vm10 = vcmask 1043456   ;;  %vm1422_vm11 = vcmask 1044480   ;;  %vm1425_vm12 = vcmask 1045504   ;;  %vm1428_vm13 = vcmask 1046528  }
  0x12   :  { %3321 = vmatprep.subr.bf16.mxu0 %v3717_v6  ;;  %3342 = vmatprep.subr.bf16.mxu1 %v3717_v6  ;;  %v3885_v51 = vsub.s32 %v1163_v49, %v1165_v50  ;;  %vm2748_vm14 = vcmask 254976   ;;  %vm2869_vm15 = vcmask 25600  }
  0x15   :  { %3323 = vmatpush3.bf16.msra.mxu0 %v3848_v12 }
  0x16   :  { %3324 = vmatprep.subr.bf16.mxu0 %v3717_v6 }
  0x18   :  { %3079 = vmatmul.mubr.f32.vlgmr.msra.gmra.mrb[2].mxu0 %v3719_v8 }
  0x19   :  { %3326 = vmatpush3.bf16.msra.mxu0 %v3831_v7  ;;  %3089 = vmatprep.mubr.msk.f32.mxu0 %vm3718_vm1, %v3719_v8 }
  0x1a   :  { %3327 = vmatprep.subr.bf16.mxu0 %v3717_v6 }
  0x1d   :  { %3329 = vmatpush3.bf16.msra.mxu0 %v3848_v12 }
  0x1e   :  { %3336 = vmatprep.subr.bf16.mxu0 %v3717_v6 }
  0xe3   :  { %v3069_v13 = vpop.f32.mrb[0].mxu0 }
  0xe4   :  { %v150_v14 = vpop.f32.mrb[1].mxu0  ;;  %v3870_v18 = vadd.f32 %v3069_v13, %v2885_v15 }
  0xe5   :  { %v3868_v16 = vadd.f32 %v2885_v15, %v150_v14 }
  0xeb   :  { %v229_v17 = vpop.f32.mrb[2].mxu0 }
  0xec   :  { %v234_v19 = vrot.slane %v229_v17, 1  ;;  %v237_v20 = vadd.f32 %v229_v17, %v3868_v16  ;;  %v3080_v21 = vpop.f32.mrb[3].mxu0 }
  0xee   :  { %v238_v22 = vadd.f32 %v234_v19, %v3870_v18  ;;  %v2888_v23 = vmul.f32 -1.442695, %v237_v20 }
  0xf0   :  { %v2889_v24 = vmul.f32 -1.442695, %v238_v22  ;;  %3465 = vpow2.f32 %v2888_v23 }
  0xf2   :  { %3467 = vpow2.f32 %v2889_v24 }
  0xf3   :  { %3469 = vtanh.f32 %v238_v22 }
  0xfa   :  { %v3466_v25 = vpop.eup %3465 }
  0xfb   :  { %v247_v27 = vadd.f32 1.0, %v3466_v25 }
  0xfc   :  { %v3468_v26 = vpop.eup %3467 }
  0xfd   :  { %v248_v28 = vadd.f32 1.0, %v3468_v26  ;;  %v3470_v31 = vpop.eup %3469 }
  0xfe   :  { %v255_v32 = vrot.slane %v3470_v31, 7 }
  0xff   :  { %3471 = vrcp.f32 %v248_v28 }
 0x100   :  { %3473 = vtanh.f32 %v237_v20 }
 0x101   :  { %3475 = vrcp.f32 %v247_v27 }
 0x109   :  { %v3472_v33 = vpop.eup %3471 }
 0x10a   :  { %v3474_v34 = vpop.eup %3473  ;;  %v261_v36 = vrot.slane %v3472_v33, 7 }
 0x10b   :  { %v3476_v37 = vpop.eup %3475  ;;  %v257_v38 = vsel %vm256_vm4, %v255_v32, %v3474_v34 }
 0x10c   :  { %v262_v39 = vsel %vm256_vm4, %v261_v36, %v3476_v37 }
 0x10d   :  { %v264_v40 = vsel %vm3874_vm5, %v257_v38, %v262_v39 }
 0x10e   :  { %267 = vrot.lane.b32.xlu0 %v264_v40, %s3720_s3  ;;  %v265_v43 = vmul.f32 0.0, %v264_v40 }
 0x180   :  { %v268_v41 = vpop.permute.xlu0 %267 }
 0x181   :  { %v270_v42 = vmul.f32 %v268_v41, %v264_v40 }
 0x183   :  { %272 = vrot.lane.b32.xlu0 %v270_v42, %s3721_s28 }
 0x1f5   :  { %v273_v44 = vpop.permute.xlu0 %272 }
 0x1f6   :  { %v275_v45 = vadd.f32 %v273_v44, %v265_v43 }
 0x1f8   :  { %3477 = vtanh.f32 %v275_v45 }
 0x202   :  { %v3478_v46 = vpop.eup %3477 }
 0x203   :  { %278 = vrot.lane.b32.xlu1 %v3478_v46, %s3720_s3 }
 0x275   :  { %v279_v52 = vpop.permute.xlu1 %278 }
 0x276   :  { %v281_v53 = vmul.f32 %v279_v52, %v264_v40 }
 0x278   :  { %v1167_v54 = vrot.slane %v281_v53, %v3885_v51  ;;  %283 = vrot.lane.b32.xlu1 %v281_v53, %s3721_s28 }
 0x27a   :  { %v1168_v55 = vcombine.high %v1167_v54, %v1167_v54  ;;  %v1175_v56 = vrot.slane %v1167_v54, %v3885_v51 }
 0x27c   :  { %v1182_v57 = vrot.slane %v1168_v55, %v3885_v51 }
 0x2ea   :  { %v284_v58 = vpop.permute.xlu1 %283 }
 0x2eb   :  { %3090 = vmatmul.mubr.msk.f32.vlgmr.msra.gmra.mrb[4].mxu0 %vm159_vm6, %v284_v58 }
 0x2ec   :  { %3338 = vmatpush3.bf16.msra.mxu0 %v3831_v7  ;;  %3111 = vmatprep.mubr.msk.f32.mxu0 %vm3718_vm1, %v3719_v8 }
 0x2ed   :  { %3339 = vmatprep.subr.bf16.mxu0 %v3717_v6 }
 0x2f0   :  { %3341 = vmatpush3.bf16.msra.mxu0 %v3848_v12 }
 0x2f1   :  { %3348 = vmatprep.subr.bf16.mxu0 %v3717_v6 }
 0x3be   :  { %v353_v59 = vpop.f32.mrb[4].mxu0 }
 0x3bf   :  { %v358_v60 = vrot.slane %v353_v59, 7  ;;  %v362_v61 = vadd.f32 %v353_v59, %v3870_v18  ;;  %v3091_v62 = vpop.f32.mrb[5].mxu0 }
 0x3c1   :  { %v361_v63 = vadd.f32 %v358_v60, %v3868_v16  ;;  %v2892_v0 = vmul.f32 -1.442695, %v362_v61 }
 0x3c3   :  { %v2891_v1 = vmul.f32 -1.442695, %v361_v63  ;;  %3479 = vpow2.f32 %v2892_v0 }
 0x3c5   :  { %3481 = vpow2.f32 %v2891_v1 }
 0x3c6   :  { %3483 = vtanh.f32 %v361_v63 }
 0x3cd   :  { %v3480_v2 = vpop.eup %3479 }
 0x3ce   :  { %v372_v5 = vadd.f32 1.0, %v3480_v2 }
 0x3cf   :  { %v3482_v3 = vpop.eup %3481 }
 0x3d0   :  { %v371_v4 = vadd.f32 1.0, %v3482_v3  ;;  %v3484_v9 = vpop.eup %3483 }
 0x3d1   :  { %v379_v10 = vrot.slane %v3484_v9, 1 }
 0x3d2   :  { %3485 = vrcp.f32 %v371_v4 }
 0x3d3   :  { %3487 = vtanh.f32 %v362_v61 }
 0x3d4   :  { %3489 = vrcp.f32 %v372_v5 }
 0x3dc   :  { %v3486_v11 = vpop.eup %3485 }
 0x3dd   :  { %v3488_v13 = vpop.eup %3487  ;;  %v384_v14 = vrot.slane %v3486_v11, 1 }
 0x3de   :  { %v3490_v15 = vpop.eup %3489  ;;  %v380_v17 = vsel %vm256_vm4, %v3488_v13, %v379_v10 }
 0x3df   :  { %v385_v19 = vsel %vm256_vm4, %v3490_v15, %v384_v14 }
 0x3e0   :  { %v387_v20 = vsel %vm3874_vm5, %v380_v17, %v385_v19 }
 0x3e1   :  { %390 = vrot.lane.b32.xlu0 %v387_v20, %s3720_s3  ;;  %v388_v23 = vmul.f32 %v387_v20, %v275_v45 }
 0x453   :  { %v391_v21 = vpop.permute.xlu0 %390 }
 0x454   :  { %v393_v22 = vmul.f32 %v391_v21, %v387_v20 }
 0x456   :  { %395 = vrot.lane.b32.xlu1 %v393_v22, %s3721_s28 }
 0x4c8   :  { %v396_v24 = vpop.permute.xlu1 %395 }
 0x4c9   :  { %v398_v25 = vadd.f32 %v396_v24, %v388_v23 }
 0x4cb   :  { %3491 = vtanh.f32 %v398_v25 }
 0x4d5   :  { %v3492_v26 = vpop.eup %3491 }
 0x4d6   :  { %401 = vrot.lane.b32.xlu0 %v3492_v26, %s3720_s3 }
 0x548   :  { %v402_v27 = vpop.permute.xlu0 %401 }
 0x549   :  { %v404_v28 = vmul.f32 %v402_v27, %v387_v20 }
 0x54b   :  { %v1191_v30 = vrot.slane %v404_v28, %v3885_v51  ;;  %406 = vrot.lane.b32.xlu1 %v404_v28, %s3721_s28 }
 0x54d   :  { %v1192_v31 = vcombine.high %v1191_v30, %v1191_v30  ;;  %v1199_v32 = vrot.slane %v1191_v30, %v3885_v51 }
 0x54f   :  { %v1206_v33 = vrot.slane %v1192_v31, %v3885_v51  ;;  %v1343_v34 = vrot.slane %v1199_v32, %v3907_v29 }
 0x551   :  { %v1347_v36 = vrot.slane %v1206_v33, %v3907_v29  ;;  %v1411_v37 = vsel %vm1410_vm7, %v1175_v56, %v1343_v34 }
 0x553   :  { %v1412_v38 = vsel %vm1410_vm7, %v1182_v57, %v1347_v36 }
 0x5bd   :  { %v407_v39 = vpop.permute.xlu1 %406 }
 0x5be   :  { %3101 = vmatmul.mubr.msk.f32.vlgmr.msra.gmra.mrb[0].mxu1 %vm159_vm6, %v407_v39 }
 0x5bf   :  { %3344 = vmatpush3.bf16.msra.mxu1 %v3831_v7  ;;  %3122 = vmatprep.mubr.msk.f32.mxu1 %vm3718_vm1, %v3719_v8 }
 0x5c0   :  { %3345 = vmatprep.subr.bf16.mxu1 %v3717_v6 }
 0x5c3   :  { %3347 = vmatpush3.bf16.msra.mxu1 %v3848_v12 }
 0x5c4   :  { %3354 = vmatprep.subr.bf16.mxu1 %v3717_v6 }
 0x691   :  { %v476_v40 = vpop.f32.mrb[0].mxu1 }
 0x692   :  { %v481_v41 = vrot.slane %v476_v40, 6  ;;  %v482_v42 = vrot.slane %v476_v40, 7  ;;  %v3102_v43 = vpop.f32.mrb[1].mxu1 }
 0x694   :  { %v485_v44 = vadd.f32 %v481_v41, %v3868_v16  ;;  %v486_v45 = vadd.f32 %v482_v42, %v3870_v18 }
 0x696   :  { %v2894_v46 = vmul.f32 -1.442695, %v485_v44  ;;  %v2895_v47 = vmul.f32 -1.442695, %v486_v45 }
 0x698   :  { %3493 = vpow2.f32 %v2894_v46 }
 0x699   :  { %3495 = vpow2.f32 %v2895_v47 }
 0x69a   :  { %3497 = vtanh.f32 %v485_v44 }
 0x69b   :  { %3499 = vtanh.f32 %v486_v45 }
 0x6a2   :  { %v3494_v48 = vpop.eup %3493 }
 0x6a3   :  { %v3496_v49 = vpop.eup %3495  ;;  %v495_v50 = vadd.f32 1.0, %v3494_v48 }
 0x6a4   :  { %v496_v52 = vadd.f32 1.0, %v3496_v49  ;;  %v3498_v53 = vpop.eup %3497 }
 0x6a5   :  { %3501 = vrcp.f32 %v495_v50  ;;  %v3500_v54 = vpop.eup %3499  ;;  %v503_v56 = vrot.slane %v3498_v53, 2 }
 0x6a6   :  { %3503 = vrcp.f32 %v496_v52  ;;  %v504_v57 = vrot.slane %v3500_v54, 1 }
 0x6a8   :  { %v505_v61 = vsel %vm256_vm4, %v504_v57, %v503_v56 }
 0x6af   :  { %v3502_v55 = vpop.eup %3501 }
 0x6b0   :  { %v3504_v58 = vpop.eup %3503  ;;  %v509_v59 = vrot.slane %v3502_v55, 2 }
 0x6b1   :  { %v510_v60 = vrot.slane %v3504_v58, 1 }
 0x6b3   :  { %v511_v62 = vsel %vm256_vm4, %v510_v60, %v509_v59 }
 0x6b4   :  { %v513_v63 = vsel %vm3874_vm5, %v505_v61, %v511_v62 }
 0x6b5   :  { %516 = vrot.lane.b32.xlu0 %v513_v63, %s3720_s3  ;;  %v514_v2 = vmul.f32 %v513_v63, %v398_v25 }
 0x727   :  { %v517_v0 = vpop.permute.xlu0 %516 }
 0x728   :  { %v519_v1 = vmul.f32 %v517_v0, %v513_v63 }
 0x72a   :  { %521 = vrot.lane.b32.xlu1 %v519_v1, %s3721_s28 }
 0x79c   :  { %v522_v3 = vpop.permute.xlu1 %521 }
 0x79d   :  { %v524_v4 = vadd.f32 %v522_v3, %v514_v2 }
 0x79f   :  { %3505 = vtanh.f32 %v524_v4 }
 0x7a9   :  { %v3506_v5 = vpop.eup %3505 }
 0x7aa   :  { %527 = vrot.lane.b32.xlu0 %v3506_v5, %s3720_s3 }
 0x81c   :  { %v528_v9 = vpop.permute.xlu0 %527 }
 0x81d   :  { %v530_v10 = vmul.f32 %v528_v9, %v513_v63 }
 0x81f   :  { %v1213_v11 = vrot.slane %v530_v10, %v3885_v51  ;;  %532 = vrot.lane.b32.xlu1 %v530_v10, %s3721_s28 }
 0x821   :  { %v1214_v13 = vcombine.high %v1213_v11, %v1213_v11  ;;  %v1221_v14 = vrot.slane %v1213_v11, %v3885_v51 }
 0x823   :  { %v1228_v15 = vrot.slane %v1214_v13, %v3885_v51  ;;  %v1353_v17 = vrot.slane %v1221_v14, %v3907_v29 }
 0x825   :  { %v1357_v19 = vrot.slane %v1228_v15, %v3907_v29  ;;  %v1414_v20 = vsel %vm1413_vm8, %v1411_v37, %v1353_v17 }
 0x827   :  { %v1415_v21 = vsel %vm1413_vm8, %v1412_v38, %v1357_v19 }
 0x891   :  { %v533_v22 = vpop.permute.xlu1 %532 }
 0x892   :  { %3112 = vmatmul.mubr.msk.f32.vlgmr.msra.gmra.mrb[6].mxu0 %vm159_vm6, %v533_v22 }
 0x893   :  { %3350 = vmatpush3.bf16.msra.mxu0 %v3831_v7  ;;  %3133 = vmatprep.mubr.msk.f32.mxu0 %vm3718_vm1, %v3719_v8 }
 0x894   :  { %3351 = vmatprep.subr.bf16.mxu0 %v3717_v6 }
 0x897   :  { %3353 = vmatpush3.bf16.msra.mxu0 %v3848_v12 }
 0x898   :  { %3360 = vmatprep.subr.bf16.mxu0 %v3717_v6 }
 0x965   :  { %v602_v23 = vpop.f32.mrb[6].mxu0 }
 0x966   :  { %v607_v24 = vrot.slane %v602_v23, 5  ;;  %v608_v25 = vrot.slane %v602_v23, 6  ;;  %v3113_v26 = vpop.f32.mrb[7].mxu0 }
 0x968   :  { %v611_v27 = vadd.f32 %v607_v24, %v3868_v16  ;;  %v612_v28 = vadd.f32 %v608_v25, %v3870_v18 }
 0x96a   :  { %v2897_v30 = vmul.f32 -1.442695, %v611_v27  ;;  %v2898_v31 = vmul.f32 -1.442695, %v612_v28 }
 0x96c   :  { %3507 = vpow2.f32 %v2897_v30 }
 0x96d   :  { %3509 = vpow2.f32 %v2898_v31 }
 0x96e   :  { %3511 = vtanh.f32 %v611_v27 }
 0x96f   :  { %3513 = vtanh.f32 %v612_v28 }
 0x976   :  { %v3508_v32 = vpop.eup %3507 }
 0x977   :  { %v3510_v33 = vpop.eup %3509  ;;  %v621_v34 = vadd.f32 1.0, %v3508_v32 }
 0x978   :  { %v622_v36 = vadd.f32 1.0, %v3510_v33  ;;  %v3512_v37 = vpop.eup %3511 }
 0x979   :  { %3515 = vrcp.f32 %v621_v34  ;;  %v3514_v38 = vpop.eup %3513  ;;  %v629_v40 = vrot.slane %v3512_v37, 3 }
 0x97a   :  { %3517 = vrcp.f32 %v622_v36  ;;  %v630_v41 = vrot.slane %v3514_v38, 2 }
 0x97c   :  { %v631_v45 = vsel %vm256_vm4, %v630_v41, %v629_v40 }
 0x983   :  { %v3516_v39 = vpop.eup %3515 }
 0x984   :  { %v3518_v42 = vpop.eup %3517  ;;  %v635_v43 = vrot.slane %v3516_v39, 3 }
 0x985   :  { %v636_v44 = vrot.slane %v3518_v42, 2 }
 0x987   :  { %v637_v46 = vsel %vm256_vm4, %v636_v44, %v635_v43 }
 0x988   :  { %v639_v47 = vsel %vm3874_vm5, %v631_v45, %v637_v46 }
 0x989   :  { %642 = vrot.lane.b32.xlu0 %v639_v47, %s3720_s3  ;;  %v640_v50 = vmul.f32 %v639_v47, %v524_v4 }
 0x9fb   :  { %v643_v48 = vpop.permute.xlu0 %642 }
 0x9fc   :  { %v645_v49 = vmul.f32 %v643_v48, %v639_v47 }
 0x9fe   :  { %647 = vrot.lane.b32.xlu1 %v645_v49, %s3721_s28 }
 0xa70   :  { %v648_v52 = vpop.permute.xlu1 %647 }
 0xa71   :  { %v650_v53 = vadd.f32 %v648_v52, %v640_v50 }
 0xa73   :  { %3519 = vtanh.f32 %v650_v53 }
 0xa7d   :  { %v3520_v54 = vpop.eup %3519 }
 0xa7e   :  { %653 = vrot.lane.b32.xlu0 %v3520_v54, %s3720_s3 }
 0xaf0   :  { %v654_v55 = vpop.permute.xlu0 %653 }
 0xaf1   :  { %v656_v56 = vmul.f32 %v654_v55, %v639_v47 }
 0xaf3   :  { %v1235_v57 = vrot.slane %v656_v56, %v3885_v51  ;;  %658 = vrot.lane.b32.xlu1 %v656_v56, %s3721_s28 }
 0xaf5   :  { %v1236_v58 = vcombine.high %v1235_v57, %v1235_v57  ;;  %v1243_v59 = vrot.slane %v1235_v57, %v3885_v51 }
 0xaf7   :  { %v1250_v60 = vrot.slane %v1236_v58, %v3885_v51  ;;  %v1363_v61 = vrot.slane %v1243_v59, %v3907_v29 }
 0xaf9   :  { %v1367_v62 = vrot.slane %v1250_v60, %v3907_v29  ;;  %v1417_v63 = vsel %vm1416_vm9, %v1414_v20, %v1363_v61 }
 0xafb   :  { %v1418_v0 = vsel %vm1416_vm9, %v1415_v21, %v1367_v62 }
 0xb65   :  { %v659_v1 = vpop.permute.xlu1 %658 }
 0xb66   :  { %3123 = vmatmul.mubr.msk.f32.vlgmr.msra.gmra.mrb[2].mxu1 %vm159_vm6, %v659_v1 }
 0xb67   :  { %3356 = vmatpush3.bf16.msra.mxu1 %v3831_v7  ;;  %3144 = vmatprep.mubr.msk.f32.mxu1 %vm3718_vm1, %v3719_v8 }
 0xb68   :  { %3357 = vmatprep.subr.bf16.mxu1 %v3717_v6 }
 0xb6b   :  { %3359 = vmatpush3.bf16.msra.mxu1 %v3848_v12 }
 0xc39   :  { %v728_v2 = vpop.f32.mrb[2].mxu1 }
 0xc3a   :  { %v733_v3 = vrot.slane %v728_v2, 4  ;;  %v734_v4 = vrot.slane %v728_v2, 5  ;;  %v3124_v5 = vpop.f32.mrb[3].mxu1 }
 0xc3c   :  { %v737_v9 = vadd.f32 %v733_v3, %v3868_v16  ;;  %v738_v10 = vadd.f32 %v734_v4, %v3870_v18 }
 0xc3e   :  { %v2900_v11 = vmul.f32 -1.442695, %v737_v9  ;;  %v2901_v13 = vmul.f32 -1.442695, %v738_v10 }
 0xc40   :  { %3521 = vpow2.f32 %v2900_v11 }
 0xc41   :  { %3523 = vpow2.f32 %v2901_v13 }
 0xc42   :  { %3525 = vtanh.f32 %v737_v9 }
 0xc43   :  { %3527 = vtanh.f32 %v738_v10 }
 0xc4a   :  { %v3522_v14 = vpop.eup %3521 }
 0xc4b   :  { %v3524_v15 = vpop.eup %3523  ;;  %v747_v17 = vadd.f32 1.0, %v3522_v14 }
 0xc4c   :  { %v748_v19 = vadd.f32 1.0, %v3524_v15  ;;  %v3526_v20 = vpop.eup %3525 }
 0xc4d   :  { %3529 = vrcp.f32 %v747_v17  ;;  %v3528_v21 = vpop.eup %3527  ;;  %v755_v23 = vrot.slane %v3526_v20, 4 }
 0xc4e   :  { %3531 = vrcp.f32 %v748_v19  ;;  %v756_v24 = vrot.slane %v3528_v21, 3 }
 0xc50   :  { %v757_v28 = vsel %vm256_vm4, %v756_v24, %v755_v23 }
 0xc57   :  { %v3530_v22 = vpop.eup %3529 }
 0xc58   :  { %v3532_v25 = vpop.eup %3531  ;;  %v761_v26 = vrot.slane %v3530_v22, 4 }
 0xc59   :  { %v762_v27 = vrot.slane %v3532_v25, 3 }
 0xc5b   :  { %v763_v30 = vsel %vm256_vm4, %v762_v27, %v761_v26 }
 0xc5c   :  { %v765_v31 = vsel %vm3874_vm5, %v757_v28, %v763_v30 }
 0xc5d   :  { %768 = vrot.lane.b32.xlu0 %v765_v31, %s3720_s3  ;;  %v766_v34 = vmul.f32 %v765_v31, %v650_v53 }
 0xccf   :  { %v769_v32 = vpop.permute.xlu0 %768 }
 0xcd0   :  { %v771_v33 = vmul.f32 %v769_v32, %v765_v31 }
 0xcd2   :  { %773 = vrot.lane.b32.xlu1 %v771_v33, %s3721_s28 }
 0xd44   :  { %v774_v36 = vpop.permute.xlu1 %773 }
 0xd45   :  { %v776_v37 = vadd.f32 %v774_v36, %v766_v34 }
 0xd47   :  { %3533 = vtanh.f32 %v776_v37 }
 0xd51   :  { %v3534_v38 = vpop.eup %3533 }
 0xd52   :  { %779 = vrot.lane.b32.xlu0 %v3534_v38, %s3720_s3 }
 0xdc4   :  { %v780_v39 = vpop.permute.xlu0 %779 }
 0xdc5   :  { %v782_v40 = vmul.f32 %v780_v39, %v765_v31 }
 0xdc7   :  { %v1257_v41 = vrot.slane %v782_v40, %v3885_v51  ;;  %784 = vrot.lane.b32.xlu1 %v782_v40, %s3721_s28 }
 0xdc9   :  { %v1258_v42 = vcombine.high %v1257_v41, %v1257_v41  ;;  %v1265_v43 = vrot.slane %v1257_v41, %v3885_v51 }
 0xdcb   :  { %v1272_v44 = vrot.slane %v1258_v42, %v3885_v51  ;;  %v1373_v45 = vrot.slane %v1265_v43, %v3907_v29 }
 0xdcd   :  { %v1377_v46 = vrot.slane %v1272_v44, %v3907_v29  ;;  %v1420_v47 = vsel %vm1419_vm10, %v1417_v63, %v1373_v45 }
 0xdcf   :  { %v1421_v48 = vsel %vm1419_vm10, %v1418_v0, %v1377_v46 }
 0xe39   :  { %v785_v49 = vpop.permute.xlu1 %784 }
 0xe3a   :  { %3134 = vmatmul.mubr.msk.f32.vlgmr.msra.gmra.mrb[8].mxu0 %vm159_vm6, %v785_v49 }
 0xe3b   :  { %3362 = vmatpush3.bf16.msra.mxu0 %v3831_v7  ;;  %3155 = vmatprep.mubr.msk.f32.mxu0 %vm3718_vm1, %v3719_v8 }
 0xe3c   :  { %3363 = vmatprep.subr.bf16.mxu0 %v3717_v6 }
 0xe3f   :  { %3365 = vmatpush3.bf16.msra.mxu0 %v3848_v12 }
 0xe40   :  { %3374 = vmatprep.subr.bf16.mxu0 %v3717_v6 }
 0xf0d   :  { %v854_v50 = vpop.f32.mrb[8].mxu0 }
 0xf0e   :  { %v859_v52 = vrot.slane %v854_v50, 3  ;;  %v860_v53 = vrot.slane %v854_v50, 4  ;;  %v3135_v54 = vpop.f32.mrb[9].mxu0 }
 0xf10   :  { %v863_v55 = vadd.f32 %v859_v52, %v3868_v16  ;;  %v864_v56 = vadd.f32 %v860_v53, %v3870_v18 }
 0xf12   :  { %v2903_v57 = vmul.f32 -1.442695, %v863_v55  ;;  %v2904_v58 = vmul.f32 -1.442695, %v864_v56 }
 0xf14   :  { %3535 = vpow2.f32 %v2903_v57 }
 0xf15   :  { %3537 = vpow2.f32 %v2904_v58 }
 0xf16   :  { %3539 = vtanh.f32 %v863_v55 }
 0xf17   :  { %3541 = vtanh.f32 %v864_v56 }
 0xf1e   :  { %v3536_v7 = vpop.eup %3535 }
 0xf1f   :  { %v3538_v59 = vpop.eup %3537  ;;  %v873_v60 = vadd.f32 1.0, %v3536_v7 }
 0xf20   :  { %v874_v12 = vadd.f32 1.0, %v3538_v59  ;;  %v3540_v61 = vpop.eup %3539 }
 0xf21   :  { %3543 = vrcp.f32 %v873_v60  ;;  %v3542_v62 = vpop.eup %3541  ;;  %v881_v0 = vrot.slane %v3540_v61, 5 }
 0xf22   :  { %3545 = vrcp.f32 %v874_v12  ;;  %v882_v1 = vrot.slane %v3542_v62, 4 }
 0xf24   :  { %v883_v5 = vsel %vm256_vm4, %v882_v1, %v881_v0 }
 0xf2b   :  { %v3544_v63 = vpop.eup %3543 }
 0xf2c   :  { %v3546_v2 = vpop.eup %3545  ;;  %v887_v3 = vrot.slane %v3544_v63, 5 }
 0xf2d   :  { %v888_v4 = vrot.slane %v3546_v2, 4 }
 0xf2f   :  { %v889_v9 = vsel %vm256_vm4, %v888_v4, %v887_v3 }
 0xf30   :  { %v891_v10 = vsel %vm3874_vm5, %v883_v5, %v889_v9 }
 0xf31   :  { %894 = vrot.lane.b32.xlu0 %v891_v10, %s3720_s3  ;;  %v892_v14 = vmul.f32 %v891_v10, %v776_v37 }
 0xfa3   :  { %v895_v11 = vpop.permute.xlu0 %894 }
 0xfa4   :  { %v897_v13 = vmul.f32 %v895_v11, %v891_v10 }
 0xfa6   :  { %899 = vrot.lane.b32.xlu1 %v897_v13, %s3721_s28 }
0x1018   :  { %v900_v15 = vpop.permute.xlu1 %899 }
0x1019   :  { %v902_v17 = vadd.f32 %v900_v15, %v892_v14 }
0x101b   :  { %3547 = vtanh.f32 %v902_v17 }
0x1025   :  { %v3548_v19 = vpop.eup %3547 }
0x1026   :  { %905 = vrot.lane.b32.xlu0 %v3548_v19, %s3720_s3 }
0x1098   :  { %v906_v20 = vpop.permute.xlu0 %905 }
0x1099   :  { %v908_v21 = vmul.f32 %v906_v20, %v891_v10 }
0x109b   :  { %v1279_v22 = vrot.slane %v908_v21, %v3885_v51  ;;  %910 = vrot.lane.b32.xlu1 %v908_v21, %s3721_s28 }
0x109d   :  { %v1280_v23 = vcombine.high %v1279_v22, %v1279_v22  ;;  %v1287_v24 = vrot.slane %v1279_v22, %v3885_v51 }
0x109f   :  { %v1294_v25 = vrot.slane %v1280_v23, %v3885_v51  ;;  %v1383_v26 = vrot.slane %v1287_v24, %v3907_v29 }
0x10a1   :  { %v1387_v27 = vrot.slane %v1294_v25, %v3907_v29  ;;  %v1423_v28 = vsel %vm1422_vm11, %v1420_v47, %v1383_v26 }
0x10a3   :  { %v1424_v30 = vsel %vm1422_vm11, %v1421_v48, %v1387_v27 }
0x110d   :  { %v911_v31 = vpop.permute.xlu1 %910 }
0x110e   :  { %3145 = vmatmul.mubr.msk.f32.vlgmr.msra.gmra.mrb[4].mxu1 %vm159_vm6, %v911_v31 }
0x11e1   :  { %v980_v32 = vpop.f32.mrb[4].mxu1 }
0x11e2   :  { %v985_v33 = vrot.slane %v980_v32, 2  ;;  %v986_v34 = vrot.slane %v980_v32, 3  ;;  %v3146_v36 = vpop.f32.mrb[5].mxu1 }
0x11e4   :  { %v989_v37 = vadd.f32 %v985_v33, %v3868_v16  ;;  %v990_v38 = vadd.f32 %v986_v34, %v3870_v18 }
0x11e6   :  { %v2906_v39 = vmul.f32 -1.442695, %v989_v37  ;;  %v2907_v40 = vmul.f32 -1.442695, %v990_v38 }
0x11e8   :  { %3549 = vpow2.f32 %v2906_v39 }
0x11e9   :  { %3551 = vpow2.f32 %v2907_v40 }
0x11ea   :  { %3553 = vtanh.f32 %v989_v37 }
0x11eb   :  { %3555 = vtanh.f32 %v990_v38 }
0x11f2   :  { %v3550_v41 = vpop.eup %3549 }
0x11f3   :  { %v3552_v42 = vpop.eup %3551  ;;  %v999_v43 = vadd.f32 1.0, %v3550_v41 }
0x11f4   :  { %v1000_v44 = vadd.f32 1.0, %v3552_v42  ;;  %v3554_v45 = vpop.eup %3553  ;;  %v1431_v42 = vld [vmem:[%s4346_s4] sm:$0xff] }
0x11f5   :  { %3557 = vrcp.f32 %v999_v43  ;;  %v3556_v46 = vpop.eup %3555  ;;  %v1007_v48 = vrot.slane %v3554_v45, 6  ;;  %v1432_v43 = vld [vmem:[%s4346_s4 + $0x8] sm:$0xff] }
0x11f6   :  { %3559 = vrcp.f32 %v1000_v44  ;;  %v1008_v49 = vrot.slane %v3556_v46, 5  ;;  %v1435_v44 = vld [vmem:[%s4347_s5] sm:$0xff]  ;;  %v3366_v46 = vpack.c.bf16 %v1432_v43, %v1431_v42 }
0x11f8   :  { %v1009_v54 = vsel %vm256_vm4, %v1008_v49, %v1007_v48  ;;  %v1433_v48 = vld [vmem:[%s4346_s4 + $0x10] sm:$0xff]  ;;  %v1434_v49 = vld [vmem:[%s4346_s4 + $0x18] sm:$0xff]  ;;  %3367 = vmatprep.subr.bf16.mxu1 %v3366_v46 }
0x11f9   :  { %3369 = vmatpush3.bf16.msra.mxu1 %v3366_v46 }
0x11ff   :  { %v3558_v47 = vpop.eup %3557 }
0x1200   :  { %v3560_v50 = vpop.eup %3559  ;;  %v1013_v52 = vrot.slane %v3558_v47, 6  ;;  %v1436_v47 = vld [vmem:[%s4347_s5 + $0x8] sm:$0xff] }
0x1201   :  { %v1014_v53 = vrot.slane %v3560_v50, 5  ;;  %v4054_v50 = vpack.c.bf16 %v1436_v47, %v1435_v44 }
0x1203   :  { %v1015_v55 = vsel %vm256_vm4, %v1014_v53, %v1013_v52  ;;  %v3370_v52 = vpack.c.bf16 %v1434_v49, %v1433_v48  ;;  %v1437_v53 = vld [vmem:[%s4347_s5 + $0x10] sm:$0xff] }
0x1204   :  { %v1017_v56 = vsel %vm3874_vm5, %v1009_v54, %v1015_v55  ;;  %v1438_v54 = vld [vmem:[%s4347_s5 + $0x18] sm:$0xff] }
0x1205   :  { %1020 = vrot.lane.b32.xlu0 %v1017_v56, %s3720_s3  ;;  %v1018_v7 = vmul.f32 %v1017_v56, %v902_v17  ;;  %v4063_v55 = vpack.c.bf16 %v1438_v54, %v1437_v53  ;;  %3371 = vmatprep.subr.bf16.mxu1 %v3370_v52 }
0x1206   :  { %3373 = vmatpush3.bf16.msra.mxu1 %v3370_v52 }
0x1207   :  { %3380 = vmatprep.subr.bf16.mxu1 %v3717_v6 }
0x1277   :  { %v1021_v57 = vpop.permute.xlu0 %1020 }
0x1278   :  { %v1023_v58 = vmul.f32 %v1021_v57, %v1017_v56 }
0x127a   :  { %1025 = vrot.lane.b32.xlu1 %v1023_v58, %s3721_s28 }
0x12ec   :  { %v1026_v59 = vpop.permute.xlu1 %1025 }
0x12ed   :  { %v1028_v60 = vadd.f32 %v1026_v59, %v1018_v7 }
0x12ef   :  { %3561 = vtanh.f32 %v1028_v60 }
0x12f9   :  { %v3562_v12 = vpop.eup %3561 }
0x12fa   :  { %1031 = vrot.lane.b32.xlu0 %v3562_v12, %s3720_s3 }
0x136c   :  { %v1032_v61 = vpop.permute.xlu0 %1031 }
0x136d   :  { %v1034_v62 = vmul.f32 %v1032_v61, %v1017_v56 }
0x136f   :  { %v1301_v63 = vrot.slane %v1034_v62, %v3885_v51  ;;  %1036 = vrot.lane.b32.xlu1 %v1034_v62, %s3721_s28 }
0x1371   :  { %v1302_v0 = vcombine.high %v1301_v63, %v1301_v63  ;;  %v1309_v1 = vrot.slane %v1301_v63, %v3885_v51 }
0x1373   :  { %v1316_v2 = vrot.slane %v1302_v0, %v3885_v51  ;;  %v1393_v3 = vrot.slane %v1309_v1, %v3907_v29 }
0x1375   :  { %v4019_v4 = vsel %vm1425_vm12, %v1423_v28, %v1393_v3  ;;  %v1397_v5 = vrot.slane %v1316_v2, %v3907_v29 }
0x1377   :  { %v4022_v9 = vsel %vm1425_vm12, %v1424_v30, %v1397_v5 }
0x13e1   :  { %v1037_v10 = vpop.permute.xlu1 %1036 }
0x13e2   :  { %3156 = vmatmul.mubr.msk.f32.vlgmr.msra.gmra.mrb[10].mxu0 %vm159_vm6, %v1037_v10 }
0x13e3   :  { %3177 = vmatprep.mubr.msk.f32.mxu0 %vm3718_vm1, %v3719_v8  ;;  %3376 = vmatpush3.bf16.msra.mxu0 %v4054_v50 }
0x13e4   :  { %3377 = vmatprep.subr.bf16.mxu0 %v3717_v6 }
0x13e7   :  { %3379 = vmatpush3.bf16.msra.mxu0 %v4063_v55 }
0x13e8   :  { %3386 = vmatprep.subr.bf16.mxu0 %v3717_v6 }
0x13ea   :  { %3178 = vmatmul.mubr.f32.vlgmr.msra.gmra.mrb[12].mxu0 %v3719_v8 }
0x13eb   :  { %3388 = vmatpush3.bf16.msra.mxu0 %v4054_v50  ;;  %3199 = vmatprep.mubr.msk.f32.mxu0 %vm3718_vm1, %v3719_v8 }
0x13ec   :  { %3389 = vmatprep.subr.bf16.mxu0 %v3717_v6 }
0x13ef   :  { %3391 = vmatpush3.bf16.msra.mxu0 %v4063_v55 }
0x13f0   :  { %3398 = vmatprep.subr.bf16.mxu0 %v3717_v6 }
0x14b5   :  { %v1106_v11 = vpop.f32.mrb[10].mxu0 }
0x14b6   :  { %v1111_v13 = vrot.slane %v1106_v11, 1  ;;  %v1112_v14 = vrot.slane %v1106_v11, 2  ;;  %v3157_v15 = vpop.f32.mrb[11].mxu0 }
0x14b8   :  { %v1115_v17 = vadd.f32 %v1111_v13, %v3868_v16  ;;  %v1116_v19 = vadd.f32 %v1112_v14, %v3870_v18 }
0x14ba   :  { %v2909_v20 = vmul.f32 -1.442695, %v1115_v17  ;;  %v2910_v21 = vmul.f32 -1.442695, %v1116_v19 }
0x14bc   :  { %3563 = vpow2.f32 %v2909_v20 }
0x14bd   :  { %3565 = vpow2.f32 %v2910_v21  ;;  %v1597_v0 = vpop.f32.mrb[12].mxu0 }
0x14be   :  { %3567 = vtanh.f32 %v1115_v17  ;;  %v3179_v1 = vpop.f32.mrb[13].mxu0 }
0x14bf   :  { %3569 = vtanh.f32 %v1116_v19 }
0x14c6   :  { %v3564_v22 = vpop.eup %3563 }
0x14c7   :  { %v3566_v23 = vpop.eup %3565  ;;  %v1125_v24 = vadd.f32 1.0, %v3564_v22 }
0x14c8   :  { %v1126_v25 = vadd.f32 1.0, %v3566_v23  ;;  %v3568_v26 = vpop.eup %3567 }
0x14c9   :  { %3571 = vrcp.f32 %v1125_v24  ;;  %v3570_v27 = vpop.eup %3569  ;;  %v1133_v30 = vrot.slane %v3568_v26, 7 }
0x14ca   :  { %3573 = vrcp.f32 %v1126_v25  ;;  %v1134_v31 = vrot.slane %v3570_v27, 6 }
0x14cc   :  { %v1135_v33 = vsel %vm256_vm4, %v1134_v31, %v1133_v30 }
0x14d3   :  { %v3572_v28 = vpop.eup %3571 }
0x14d4   :  { %v3574_v16 = vpop.eup %3573  ;;  %v1139_v32 = vrot.slane %v3572_v28, 7 }
0x14d5   :  { %v1140_v18 = vrot.slane %v3574_v16, 6 }
0x14d7   :  { %v1141_v34 = vsel %vm256_vm4, %v1140_v18, %v1139_v32 }
0x14d8   :  { %v1143_v36 = vsel %vm3874_vm5, %v1135_v33, %v1141_v34 }
0x14d9   :  { %1146 = vrot.lane.b32.xlu0 %v1143_v36, %s3720_s3  ;;  %v1144_v39 = vmul.f32 %v1143_v36, %v1028_v60 }
0x154b   :  { %v1147_v37 = vpop.permute.xlu0 %1146 }
0x154c   :  { %v1149_v38 = vmul.f32 %v1147_v37, %v1143_v36 }
0x154e   :  { %1151 = vrot.lane.b32.xlu1 %v1149_v38, %s3721_s28 }
0x15c0   :  { %v1152_v40 = vpop.permute.xlu1 %1151 }
0x15c1   :  { %v1154_v41 = vadd.f32 %v1152_v40, %v1144_v39 }
0x15c3   :  { %3575 = vtanh.f32 %v1154_v41 }
0x15cd   :  { %v3576_v45 = vpop.eup %3575 }
0x15ce   :  { %1157 = vrot.lane.b32.xlu0 %v3576_v45, %s3720_s3 }
0x1640   :  { %v1158_v56 = vpop.permute.xlu0 %1157 }
0x1641   :  { %v1160_v57 = vmul.f32 %v1158_v56, %v1143_v36 }
0x1643   :  { %v1324_v58 = vrot.slane %v1160_v57, %v3885_v51 }
0x1645   :  { %v1325_v7 = vcombine.high %v1324_v58, %v1324_v58  ;;  %v1332_v59 = vrot.slane %v1324_v58, %v3885_v51 }
0x1647   :  { %v1339_v60 = vrot.slane %v1325_v7, %v3885_v51  ;;  %v1403_v12 = vrot.slane %v1332_v59, %v3907_v29  ;;  %v2911_v51 = vld [vmem:[%s4348_s6] ss:$0 sm:$0xff] }
0x1649   :  { %v1429_v61 = vsel %vm1428_vm13, %v4019_v4, %v1403_v12  ;;  %v1407_v62 = vrot.slane %v1339_v60, %v3907_v29  ;;  %v1602_v29 = vrot.slane %v1597_v0, 1 }
0x164a   :  { %1448 = vrot.lane.b32.xlu1 %v1429_v61, %s3721_s28 }
0x164b   :  { %v1430_v63 = vsel %vm1428_vm13, %v4022_v9, %v1407_v62 }
0x164c   :  { %1450 = vrot.lane.b32.xlu0 %v1430_v63, %s3721_s28 }
0x16bc   :  { %v1449_v2 = vpop.permute.xlu1 %1448 }
0x16bd   :  { %3166 = vmatprep.mubr.msk.f32.mxu1 %vm159_vm6, %v1449_v2 }
0x16be   :  { %v1451_v3 = vpop.permute.xlu0 %1450 }
0x16bf   :  { %3167 = vmatmul.mubr.msk.f32.vlgmr.msra.gmra.mrb[6].mxu1 %vm159_vm6, %v1451_v3 }
0x16c0   :  { %3382 = vmatpush3.bf16.msra.mxu1 %v4054_v50  ;;  %3188 = vmatprep.mubr.msk.f32.mxu1 %vm3718_vm1, %v3719_v8 }
0x16c1   :  { %3383 = vmatprep.subr.bf16.mxu1 %v3717_v6 }
0x16c4   :  { %3385 = vmatpush3.bf16.msra.mxu1 %v4063_v55 }
0x16c5   :  { %3392 = vmatprep.subr.bf16.mxu1 %v3717_v6 }
0x1792   :  { %v3168_v4 = vpop.f32.mrb[6].mxu1 }
0x1793   :  { %v4096_v5 = vadd.f32 %v3168_v4, %v2911_v51  ;;  %v1522_v9 = vpop.f32.mrb[7].mxu1 }
0x1794   :  { %v4098_v10 = vadd.f32 %v2911_v51, %v1522_v9 }
0x1795   :  { %v1606_v11 = vadd.f32 %v1602_v29, %v4096_v5 }
0x1796   :  { %v1605_v13 = vadd.f32 %v1597_v0, %v4098_v10 }
0x1797   :  { %v2915_v14 = vmul.f32 -1.442695, %v1606_v11 }
0x1798   :  { %v2914_v15 = vmul.f32 -1.442695, %v1605_v13 }
0x1799   :  { %3577 = vpow2.f32 %v2915_v14 }
0x179a   :  { %3579 = vpow2.f32 %v2914_v15 }
0x179b   :  { %3581 = vtanh.f32 %v1606_v11 }
0x179c   :  { %3583 = vtanh.f32 %v1605_v13 }
0x17a3   :  { %v3578_v17 = vpop.eup %3577 }
0x17a4   :  { %v3580_v19 = vpop.eup %3579  ;;  %v1616_v20 = vadd.f32 1.0, %v3578_v17 }
0x17a5   :  { %v1615_v21 = vadd.f32 1.0, %v3580_v19  ;;  %v3582_v22 = vpop.eup %3581 }
0x17a6   :  { %3585 = vrcp.f32 %v1616_v20  ;;  %v3584_v23 = vpop.eup %3583  ;;  %v1623_v24 = vrot.slane %v3582_v22, 7 }
0x17a7   :  { %3587 = vrcp.f32 %v1615_v21 }
0x17a8   :  { %v1624_v28 = vsel %vm256_vm4, %v1623_v24, %v3584_v23 }
0x17b0   :  { %v3586_v25 = vpop.eup %3585 }
0x17b1   :  { %v3588_v26 = vpop.eup %3587  ;;  %v1628_v27 = vrot.slane %v3586_v25, 7 }
0x17b3   :  { %v1629_v30 = vsel %vm256_vm4, %v1628_v27, %v3588_v26 }
0x17b4   :  { %v1631_v31 = vsel %vm3874_vm5, %v1624_v28, %v1629_v30 }
0x17b5   :  { %1634 = vrot.lane.b32.xlu1 %v1631_v31, %s3720_s3  ;;  %v1632_v18 = vmul.f32 0.0, %v1631_v31 }
0x1827   :  { %v1635_v16 = vpop.permute.xlu1 %1634 }
0x1828   :  { %v1637_v32 = vmul.f32 %v1635_v16, %v1631_v31 }
0x182a   :  { %1639 = vrot.lane.b32.xlu0 %v1637_v32, %s3721_s28 }
0x189c   :  { %v1640_v33 = vpop.permute.xlu0 %1639 }
0x189d   :  { %v1642_v34 = vadd.f32 %v1640_v33, %v1632_v18 }
0x189f   :  { %3589 = vtanh.f32 %v1642_v34 }
0x18a9   :  { %v3590_v36 = vpop.eup %3589 }
0x18aa   :  { %1645 = vrot.lane.b32.xlu1 %v3590_v36, %s3720_s3 }
0x191c   :  { %v1646_v37 = vpop.permute.xlu1 %1645 }
0x191d   :  { %v1648_v38 = vmul.f32 %v1646_v37, %v1631_v31 }
0x191f   :  { %1650 = vrot.lane.b32.xlu0 %v1648_v38, %s3721_s28 }
0x1991   :  { %v1651_v39 = vpop.permute.xlu0 %1650 }
0x1992   :  { %3189 = vmatmul.mubr.msk.f32.vlgmr.msra.gmra.mrb[8].mxu1 %vm159_vm6, %v1651_v39 }
0x1993   :  { %3394 = vmatpush3.bf16.msra.mxu1 %v4054_v50  ;;  %3210 = vmatprep.mubr.msk.f32.mxu1 %vm3718_vm1, %v3719_v8 }
0x1994   :  { %3395 = vmatprep.subr.bf16.mxu1 %v3717_v6 }
0x1997   :  { %3397 = vmatpush3.bf16.msra.mxu1 %v4063_v55 }
0x1998   :  { %3404 = vmatprep.subr.bf16.mxu1 %v3717_v6 }
0x1a65   :  { %v1720_v40 = vpop.f32.mrb[8].mxu1 }
0x1a66   :  { %v1725_v41 = vrot.slane %v1720_v40, 7  ;;  %v1729_v42 = vadd.f32 %v1720_v40, %v4096_v5  ;;  %v3190_v43 = vpop.f32.mrb[9].mxu1 }
0x1a68   :  { %v1728_v44 = vadd.f32 %v1725_v41, %v4098_v10  ;;  %v2918_v45 = vmul.f32 -1.442695, %v1729_v42 }
0x1a6a   :  { %v2917_v46 = vmul.f32 -1.442695, %v1728_v44  ;;  %3591 = vpow2.f32 %v2918_v45 }
0x1a6c   :  { %3593 = vpow2.f32 %v2917_v46 }
0x1a6d   :  { %3595 = vtanh.f32 %v1728_v44 }
0x1a74   :  { %v3592_v47 = vpop.eup %3591 }
0x1a75   :  { %v1739_v52 = vadd.f32 1.0, %v3592_v47 }
0x1a76   :  { %v3594_v48 = vpop.eup %3593 }
0x1a77   :  { %v1738_v49 = vadd.f32 1.0, %v3594_v48  ;;  %v3596_v53 = vpop.eup %3595 }
0x1a78   :  { %v1746_v54 = vrot.slane %v3596_v53, 1 }
0x1a79   :  { %3597 = vrcp.f32 %v1738_v49 }
0x1a7a   :  { %3599 = vtanh.f32 %v1729_v42 }
0x1a7b   :  { %3601 = vrcp.f32 %v1739_v52 }
0x1a83   :  { %v3598_v56 = vpop.eup %3597 }
0x1a84   :  { %v3600_v57 = vpop.eup %3599  ;;  %v1751_v58 = vrot.slane %v3598_v56, 1 }
0x1a85   :  { %v3602_v7 = vpop.eup %3601  ;;  %v1747_v59 = vsel %vm256_vm4, %v3600_v57, %v1746_v54 }
0x1a86   :  { %v1752_v60 = vsel %vm256_vm4, %v3602_v7, %v1751_v58 }
0x1a87   :  { %v1754_v12 = vsel %vm3874_vm5, %v1747_v59, %v1752_v60 }
0x1a88   :  { %1757 = vrot.lane.b32.xlu1 %v1754_v12, %s3720_s3  ;;  %v1755_v63 = vmul.f32 %v1754_v12, %v1642_v34 }
0x1afa   :  { %v1758_v61 = vpop.permute.xlu1 %1757 }
0x1afb   :  { %v1760_v62 = vmul.f32 %v1758_v61, %v1754_v12 }
0x1afd   :  { %1762 = vrot.lane.b32.xlu0 %v1760_v62, %s3721_s28 }
0x1b6f   :  { %v1763_v0 = vpop.permute.xlu0 %1762 }
0x1b70   :  { %v1765_v1 = vadd.f32 %v1763_v0, %v1755_v63 }
0x1b72   :  { %3603 = vtanh.f32 %v1765_v1 }
0x1b7c   :  { %v3604_v2 = vpop.eup %3603 }
0x1b7d   :  { %1768 = vrot.lane.b32.xlu1 %v3604_v2, %s3720_s3 }
0x1bef   :  { %v1769_v3 = vpop.permute.xlu1 %1768 }
0x1bf0   :  { %v1771_v51 = vmul.f32 %v1769_v3, %v1754_v12 }
0x1bf2   :  { %1773 = vrot.lane.b32.xlu0 %v1771_v51, %s3721_s28 }
0x1c64   :  { %v1774_v29 = vpop.permute.xlu0 %1773 }
0x1c65   :  { %3200 = vmatmul.mubr.msk.f32.vlgmr.msra.gmra.mrb[14].mxu0 %vm159_vm6, %v1774_v29 }
0x1c66   :  { %3400 = vmatpush3.bf16.msra.mxu0 %v4054_v50  ;;  %3221 = vmatprep.mubr.msk.f32.mxu0 %vm3718_vm1, %v3719_v8 }
0x1c67   :  { %3401 = vmatprep.subr.bf16.mxu0 %v3717_v6 }
0x1c6a   :  { %3403 = vmatpush3.bf16.msra.mxu0 %v4063_v55 }
0x1c6b   :  { %3410 = vmatprep.subr.bf16.mxu0 %v3717_v6 }
0x1d38   :  { %v1843_v4 = vpop.f32.mrb[14].mxu0 }
0x1d39   :  { %v1848_v9 = vrot.slane %v1843_v4, 6  ;;  %v1849_v11 = vrot.slane %v1843_v4, 7  ;;  %v3201_v13 = vpop.f32.mrb[15].mxu0 }
0x1d3b   :  { %v1852_v14 = vadd.f32 %v1848_v9, %v4098_v10  ;;  %v1853_v15 = vadd.f32 %v1849_v11, %v4096_v5 }
0x1d3d   :  { %v2920_v17 = vmul.f32 -1.442695, %v1852_v14  ;;  %v2921_v19 = vmul.f32 -1.442695, %v1853_v15 }
0x1d3f   :  { %3605 = vpow2.f32 %v2920_v17 }
0x1d40   :  { %3607 = vpow2.f32 %v2921_v19 }
0x1d41   :  { %3609 = vtanh.f32 %v1852_v14 }
0x1d42   :  { %3611 = vtanh.f32 %v1853_v15 }
0x1d49   :  { %v3606_v20 = vpop.eup %3605 }
0x1d4a   :  { %v3608_v21 = vpop.eup %3607  ;;  %v1862_v22 = vadd.f32 1.0, %v3606_v20 }
0x1d4b   :  { %v1863_v23 = vadd.f32 1.0, %v3608_v21  ;;  %v3610_v24 = vpop.eup %3609 }
0x1d4c   :  { %3613 = vrcp.f32 %v1862_v22  ;;  %v3612_v25 = vpop.eup %3611  ;;  %v1870_v27 = vrot.slane %v3610_v24, 2 }
0x1d4d   :  { %3615 = vrcp.f32 %v1863_v23  ;;  %v1871_v28 = vrot.slane %v3612_v25, 1 }
0x1d4f   :  { %v1872_v32 = vsel %vm256_vm4, %v1871_v28, %v1870_v27 }
0x1d56   :  { %v3614_v26 = vpop.eup %3613 }
0x1d57   :  { %v3616_v30 = vpop.eup %3615  ;;  %v1876_v31 = vrot.slane %v3614_v26, 2 }
0x1d58   :  { %v1877_v16 = vrot.slane %v3616_v30, 1 }
0x1d5a   :  { %v1878_v18 = vsel %vm256_vm4, %v1877_v16, %v1876_v31 }
0x1d5b   :  { %v1880_v33 = vsel %vm3874_vm5, %v1872_v32, %v1878_v18 }
0x1d5c   :  { %1883 = vrot.lane.b32.xlu1 %v1880_v33, %s3720_s3  ;;  %v1881_v37 = vmul.f32 %v1880_v33, %v1765_v1 }
0x1dce   :  { %v1884_v34 = vpop.permute.xlu1 %1883 }
0x1dcf   :  { %v1886_v36 = vmul.f32 %v1884_v34, %v1880_v33 }
0x1dd1   :  { %1888 = vrot.lane.b32.xlu0 %v1886_v36, %s3721_s28 }
0x1e43   :  { %v1889_v38 = vpop.permute.xlu0 %1888 }
0x1e44   :  { %v1891_v39 = vadd.f32 %v1889_v38, %v1881_v37 }
0x1e46   :  { %3617 = vtanh.f32 %v1891_v39 }
0x1e50   :  { %v3618_v40 = vpop.eup %3617 }
0x1e51   :  { %1894 = vrot.lane.b32.xlu1 %v3618_v40, %s3720_s3 }
0x1ec3   :  { %v1895_v41 = vpop.permute.xlu1 %1894 }
0x1ec4   :  { %v1897_v42 = vmul.f32 %v1895_v41, %v1880_v33 }
0x1ec6   :  { %1899 = vrot.lane.b32.xlu0 %v1897_v42, %s3721_s28 }
0x1f38   :  { %v1900_v43 = vpop.permute.xlu0 %1899 }
0x1f39   :  { %3211 = vmatmul.mubr.msk.f32.vlgmr.msra.gmra.mrb[10].mxu1 %vm159_vm6, %v1900_v43 }
0x1f3a   :  { %3406 = vmatpush3.bf16.msra.mxu1 %v4054_v50  ;;  %3232 = vmatprep.mubr.msk.f32.mxu1 %vm3718_vm1, %v3719_v8 }
0x1f3b   :  { %3407 = vmatprep.subr.bf16.mxu1 %v3717_v6 }
0x1f3e   :  { %3409 = vmatpush3.bf16.msra.mxu1 %v4063_v55 }
0x1f3f   :  { %3416 = vmatprep.subr.bf16.mxu1 %v3717_v6 }
0x200c   :  { %v1969_v44 = vpop.f32.mrb[10].mxu1 }
0x200d   :  { %v1974_v45 = vrot.slane %v1969_v44, 5  ;;  %v1975_v46 = vrot.slane %v1969_v44, 6  ;;  %v3212_v47 = vpop.f32.mrb[11].mxu1 }
0x200f   :  { %v1978_v48 = vadd.f32 %v1974_v45, %v4098_v10  ;;  %v1979_v49 = vadd.f32 %v1975_v46, %v4096_v5 }
0x2011   :  { %v2923_v52 = vmul.f32 -1.442695, %v1978_v48  ;;  %v2924_v53 = vmul.f32 -1.442695, %v1979_v49 }
0x2013   :  { %3619 = vpow2.f32 %v2923_v52 }
0x2014   :  { %3621 = vpow2.f32 %v2924_v53 }
0x2015   :  { %3623 = vtanh.f32 %v1978_v48 }
0x2016   :  { %3625 = vtanh.f32 %v1979_v49 }
0x201d   :  { %v3620_v54 = vpop.eup %3619 }
0x201e   :  { %v3622_v56 = vpop.eup %3621  ;;  %v1988_v57 = vadd.f32 1.0, %v3620_v54 }
0x201f   :  { %v1989_v58 = vadd.f32 1.0, %v3622_v56  ;;  %v3624_v7 = vpop.eup %3623 }
0x2020   :  { %3627 = vrcp.f32 %v1988_v57  ;;  %v3626_v59 = vpop.eup %3625  ;;  %v1996_v12 = vrot.slane %v3624_v7, 3 }
0x2021   :  { %3629 = vrcp.f32 %v1989_v58  ;;  %v1997_v61 = vrot.slane %v3626_v59, 2 }
0x2023   :  { %v1998_v1 = vsel %vm256_vm4, %v1997_v61, %v1996_v12 }
0x202a   :  { %v3628_v60 = vpop.eup %3627 }
0x202b   :  { %v3630_v62 = vpop.eup %3629  ;;  %v2002_v63 = vrot.slane %v3628_v60, 3 }
0x202c   :  { %v2003_v0 = vrot.slane %v3630_v62, 2 }
0x202e   :  { %v2004_v2 = vsel %vm256_vm4, %v2003_v0, %v2002_v63 }
0x202f   :  { %v2006_v3 = vsel %vm3874_vm5, %v1998_v1, %v2004_v2 }
0x2030   :  { %2009 = vrot.lane.b32.xlu1 %v2006_v3, %s3720_s3  ;;  %v2007_v4 = vmul.f32 %v2006_v3, %v1891_v39 }
0x20a2   :  { %v2010_v51 = vpop.permute.xlu1 %2009 }
0x20a3   :  { %v2012_v29 = vmul.f32 %v2010_v51, %v2006_v3 }
0x20a5   :  { %2014 = vrot.lane.b32.xlu0 %v2012_v29, %s3721_s28 }
0x2117   :  { %v2015_v9 = vpop.permute.xlu0 %2014 }
0x2118   :  { %v2017_v11 = vadd.f32 %v2015_v9, %v2007_v4 }
0x211a   :  { %3631 = vtanh.f32 %v2017_v11 }
0x2124   :  { %v3632_v13 = vpop.eup %3631 }
0x2125   :  { %2020 = vrot.lane.b32.xlu1 %v3632_v13, %s3720_s3 }
0x2197   :  { %v2021_v14 = vpop.permute.xlu1 %2020 }
0x2198   :  { %v2023_v15 = vmul.f32 %v2021_v14, %v2006_v3 }
0x219a   :  { %2025 = vrot.lane.b32.xlu0 %v2023_v15, %s3721_s28 }
0x220c   :  { %v2026_v17 = vpop.permute.xlu0 %2025 }
0x220d   :  { %3222 = vmatmul.mubr.msk.f32.vlgmr.msra.gmra.mrb[16].mxu0 %vm159_vm6, %v2026_v17 }
0x220e   :  { %3412 = vmatpush3.bf16.msra.mxu0 %v4054_v50  ;;  %3243 = vmatprep.mubr.msk.f32.mxu0 %vm3718_vm1, %v3719_v8 }
0x220f   :  { %3413 = vmatprep.subr.bf16.mxu0 %v3717_v6 }
0x2212   :  { %3415 = vmatpush3.bf16.msra.mxu0 %v4063_v55 }
0x2213   :  { %3422 = vmatprep.subr.bf16.mxu0 %v3717_v6 }
0x22e0   :  { %v2095_v19 = vpop.f32.mrb[16].mxu0 }
0x22e1   :  { %v2100_v20 = vrot.slane %v2095_v19, 4  ;;  %v2101_v21 = vrot.slane %v2095_v19, 5  ;;  %v3223_v22 = vpop.f32.mrb[17].mxu0 }
0x22e3   :  { %v2104_v23 = vadd.f32 %v2100_v20, %v4098_v10  ;;  %v2105_v24 = vadd.f32 %v2101_v21, %v4096_v5 }
0x22e5   :  { %v2926_v25 = vmul.f32 -1.442695, %v2104_v23  ;;  %v2927_v26 = vmul.f32 -1.442695, %v2105_v24 }
0x22e7   :  { %3633 = vpow2.f32 %v2926_v25 }
0x22e8   :  { %3635 = vpow2.f32 %v2927_v26 }
0x22e9   :  { %3637 = vtanh.f32 %v2104_v23 }
0x22ea   :  { %3639 = vtanh.f32 %v2105_v24 }
0x22f1   :  { %v3634_v27 = vpop.eup %3633 }
0x22f2   :  { %v3636_v28 = vpop.eup %3635  ;;  %v2114_v30 = vadd.f32 1.0, %v3634_v27 }
0x22f3   :  { %v2115_v31 = vadd.f32 1.0, %v3636_v28  ;;  %v3638_v16 = vpop.eup %3637 }
0x22f4   :  { %3641 = vrcp.f32 %v2114_v30  ;;  %v3640_v32 = vpop.eup %3639  ;;  %v2122_v33 = vrot.slane %v3638_v16, 4 }
0x22f5   :  { %3643 = vrcp.f32 %v2115_v31  ;;  %v2123_v34 = vrot.slane %v3640_v32, 3 }
0x22f7   :  { %v2124_v39 = vsel %vm256_vm4, %v2123_v34, %v2122_v33 }
0x22fe   :  { %v3642_v18 = vpop.eup %3641 }
0x22ff   :  { %v3644_v36 = vpop.eup %3643  ;;  %v2128_v37 = vrot.slane %v3642_v18, 4 }
0x2300   :  { %v2129_v38 = vrot.slane %v3644_v36, 3 }
0x2302   :  { %v2130_v40 = vsel %vm256_vm4, %v2129_v38, %v2128_v37 }
0x2303   :  { %v2132_v41 = vsel %vm3874_vm5, %v2124_v39, %v2130_v40 }
0x2304   :  { %2135 = vrot.lane.b32.xlu1 %v2132_v41, %s3720_s3  ;;  %v2133_v44 = vmul.f32 %v2132_v41, %v2017_v11 }
0x2376   :  { %v2136_v42 = vpop.permute.xlu1 %2135 }
0x2377   :  { %v2138_v43 = vmul.f32 %v2136_v42, %v2132_v41 }
0x2379   :  { %2140 = vrot.lane.b32.xlu0 %v2138_v43, %s3721_s28 }
0x23eb   :  { %v2141_v45 = vpop.permute.xlu0 %2140 }
0x23ec   :  { %v2143_v46 = vadd.f32 %v2141_v45, %v2133_v44 }
0x23ee   :  { %3645 = vtanh.f32 %v2143_v46 }
0x23f8   :  { %v3646_v47 = vpop.eup %3645 }
0x23f9   :  { %2146 = vrot.lane.b32.xlu1 %v3646_v47, %s3720_s3 }
0x246b   :  { %v2147_v48 = vpop.permute.xlu1 %2146 }
0x246c   :  { %v2149_v49 = vmul.f32 %v2147_v48, %v2132_v41 }
0x246e   :  { %2151 = vrot.lane.b32.xlu0 %v2149_v49, %s3721_s28 }
0x24e0   :  { %v2152_v52 = vpop.permute.xlu0 %2151 }
0x24e1   :  { %3233 = vmatmul.mubr.msk.f32.vlgmr.msra.gmra.mrb[12].mxu1 %vm159_vm6, %v2152_v52 }
0x24e2   :  { %3418 = vmatpush3.bf16.msra.mxu1 %v4054_v50  ;;  %3254 = vmatprep.mubr.msk.f32.mxu1 %vm3718_vm1, %v3719_v8 }
0x24e3   :  { %3419 = vmatprep.subr.bf16.mxu1 %v3717_v6 }
0x24e6   :  { %3421 = vmatpush3.bf16.msra.mxu1 %v4063_v55 }
0x24e7   :  { %3428 = vmatprep.subr.bf16.mxu1 %v3717_v6 }
0x25b4   :  { %v2221_v53 = vpop.f32.mrb[12].mxu1 }
0x25b5   :  { %v2226_v54 = vrot.slane %v2221_v53, 3  ;;  %v2227_v56 = vrot.slane %v2221_v53, 4  ;;  %v3234_v57 = vpop.f32.mrb[13].mxu1 }
0x25b7   :  { %v2230_v58 = vadd.f32 %v2226_v54, %v4098_v10  ;;  %v2231_v7 = vadd.f32 %v2227_v56, %v4096_v5 }
0x25b9   :  { %v2929_v59 = vmul.f32 -1.442695, %v2230_v58  ;;  %v2930_v60 = vmul.f32 -1.442695, %v2231_v7 }
0x25bb   :  { %3647 = vpow2.f32 %v2929_v59 }
0x25bc   :  { %3649 = vpow2.f32 %v2930_v60 }
0x25bd   :  { %3651 = vtanh.f32 %v2230_v58 }
0x25be   :  { %3653 = vtanh.f32 %v2231_v7 }
0x25c5   :  { %v3648_v50 = vpop.eup %3647 }
0x25c6   :  { %v3650_v12 = vpop.eup %3649  ;;  %v2240_v61 = vadd.f32 1.0, %v3648_v50 }
0x25c7   :  { %v2241_v55 = vadd.f32 1.0, %v3650_v12  ;;  %v3652_v62 = vpop.eup %3651 }
0x25c8   :  { %3655 = vrcp.f32 %v2240_v61  ;;  %v3654_v63 = vpop.eup %3653  ;;  %v2248_v1 = vrot.slane %v3652_v62, 5 }
0x25c9   :  { %3657 = vrcp.f32 %v2241_v55  ;;  %v2249_v2 = vrot.slane %v3654_v63, 4 }
0x25cb   :  { %v2250_v4 = vsel %vm256_vm4, %v2249_v2, %v2248_v1 }
0x25d2   :  { %v3656_v0 = vpop.eup %3655 }
0x25d3   :  { %v3658_v3 = vpop.eup %3657  ;;  %v2254_v51 = vrot.slane %v3656_v0, 5 }
0x25d4   :  { %v2255_v29 = vrot.slane %v3658_v3, 4 }
0x25d6   :  { %v2256_v9 = vsel %vm256_vm4, %v2255_v29, %v2254_v51 }
0x25d7   :  { %v2258_v11 = vsel %vm3874_vm5, %v2250_v4, %v2256_v9 }
0x25d8   :  { %2261 = vrot.lane.b32.xlu1 %v2258_v11, %s3720_s3  ;;  %v2259_v15 = vmul.f32 %v2258_v11, %v2143_v46 }
0x264a   :  { %v2262_v13 = vpop.permute.xlu1 %2261 }
0x264b   :  { %v2264_v14 = vmul.f32 %v2262_v13, %v2258_v11 }
0x264d   :  { %2266 = vrot.lane.b32.xlu0 %v2264_v14, %s3721_s28 }
0x26bf   :  { %v2267_v17 = vpop.permute.xlu0 %2266 }
0x26c0   :  { %v2269_v19 = vadd.f32 %v2267_v17, %v2259_v15 }
0x26c2   :  { %3659 = vtanh.f32 %v2269_v19 }
0x26cc   :  { %v3660_v20 = vpop.eup %3659 }
0x26cd   :  { %2272 = vrot.lane.b32.xlu1 %v3660_v20, %s3720_s3 }
0x273f   :  { %v2273_v21 = vpop.permute.xlu1 %2272 }
0x2740   :  { %v2275_v22 = vmul.f32 %v2273_v21, %v2258_v11 }
0x2742   :  { %2277 = vrot.lane.b32.xlu0 %v2275_v22, %s3721_s28 }
0x27b4   :  { %v2278_v23 = vpop.permute.xlu0 %2277 }
0x27b5   :  { %3244 = vmatmul.mubr.msk.f32.vlgmr.msra.gmra.mrb[18].mxu0 %vm159_vm6, %v2278_v23  ;;  %v2528_v23 = vld [vmem:[%s4349_s7] sm:$0xff] }
0x27b6   :  { %3265 = vmatprep.mubr.msk.f32.mxu0 %vm3718_vm1, %v3719_v8 }
0x2888   :  { %v2347_v24 = vpop.f32.mrb[18].mxu0 }
0x2889   :  { %v2352_v25 = vrot.slane %v2347_v24, 2  ;;  %v2353_v26 = vrot.slane %v2347_v24, 3  ;;  %v3245_v27 = vpop.f32.mrb[19].mxu0  ;;  %v2529_v24 = vld [vmem:[%s4349_s7 + $0x8] sm:$0xff] }
0x288b   :  { %v2356_v28 = vadd.f32 %v2352_v25, %v4098_v10  ;;  %v2357_v30 = vadd.f32 %v2353_v26, %v4096_v5  ;;  %v3423_v25 = vpack.c.bf16 %v2529_v24, %v2528_v23  ;;  %v2531_v26 = vld [vmem:[%s4349_s7 + $0x18] sm:$0xff]  ;;  %v2785_v24 = vld [vmem:[%s4357_s15] sm:$0xff] }
0x288c   :  { %v3426_v27 = vpack.c.bf16 %v2531_v26, %v2530_v35  ;;  %v2786_v35 = vld [vmem:[%s4357_s15 + $0x8] sm:$0xff]  ;;  %v2787_v26 = vld [vmem:[%s4357_s15 + $0x10] sm:$0xff] }
0x288d   :  { %v2932_v31 = vmul.f32 -1.442695, %v2356_v28  ;;  %v2933_v16 = vmul.f32 -1.442695, %v2357_v30  ;;  %3424 = vmatpush3.bf16.msra.mxu0 %v3423_v25  ;;  %v3453_v25 = vpack.c.bf16 %v2786_v35, %v2785_v24 }
0x288e   :  { %3425 = vmatprep.subr.bf16.mxu0 %v3717_v6 }
0x288f   :  { %3661 = vpow2.f32 %v2932_v31 }
0x2890   :  { %3663 = vpow2.f32 %v2933_v16 }
0x2891   :  { %3665 = vtanh.f32 %v2356_v28  ;;  %3427 = vmatpush3.bf16.msra.mxu0 %v3426_v27  ;;  %v2788_v27 = vld [vmem:[%s4357_s15 + $0x18] sm:$0xff] }
0x2892   :  { %3667 = vtanh.f32 %v2357_v30  ;;  %3452 = vmatprep.subr.bf16.mxu0 %v3717_v6 }
0x2899   :  { %v3662_v32 = vpop.eup %3661 }
0x289a   :  { %v3664_v18 = vpop.eup %3663  ;;  %v2366_v33 = vadd.f32 1.0, %v3662_v32  ;;  %v2653_v32 = vld [vmem:[%s4353_s11] sm:$0xff] }
0x289b   :  { %v2367_v34 = vadd.f32 1.0, %v3664_v18  ;;  %v3666_v36 = vpop.eup %3665  ;;  %v2654_v18 = vld [vmem:[%s4353_s11 + $0x8] sm:$0xff] }
0x289c   :  { %3669 = vrcp.f32 %v2366_v33  ;;  %v3668_v37 = vpop.eup %3667  ;;  %v2374_v39 = vrot.slane %v3666_v36, 6  ;;  %v3429_v33 = vpack.c.bf16 %v2654_v18, %v2653_v32 }
0x289d   :  { %3671 = vrcp.f32 %v2367_v34  ;;  %v2375_v40 = vrot.slane %v3668_v37, 5  ;;  %v2655_v34 = vld [vmem:[%s4353_s11 + $0x10] sm:$0xff]  ;;  %v2657_v37 = vld [vmem:[%s4353_s11 + $0x20] sm:$0xff] }
0x289f   :  { %v2376_v44 = vsel %vm256_vm4, %v2375_v40, %v2374_v39  ;;  %v2659_v40 = vld [vmem:[%s4353_s11 + $0x30] sm:$0xff] }
0x28a6   :  { %v3670_v38 = vpop.eup %3669 }
0x28a7   :  { %v3672_v41 = vpop.eup %3671  ;;  %v2380_v42 = vrot.slane %v3670_v38, 6  ;;  %v2658_v38 = vld [vmem:[%s4353_s11 + $0x28] sm:$0xff] }
0x28a8   :  { %v2381_v43 = vrot.slane %v3672_v41, 5  ;;  %v3435_v39 = vpack.c.bf16 %v2658_v38, %v2657_v37  ;;  %v2660_v41 = vld [vmem:[%s4353_s11 + $0x38] sm:$0xff] }
0x28aa   :  { %v2382_v45 = vsel %vm256_vm4, %v2381_v43, %v2380_v42  ;;  %v3438_v42 = vpack.c.bf16 %v2660_v41, %v2659_v40  ;;  %v2661_v43 = vld [vmem:[%s4353_s11 + $0x40] sm:$0xff] }
0x28ab   :  { %v2384_v46 = vsel %vm3874_vm5, %v2376_v44, %v2382_v45  ;;  %v2662_v44 = vld [vmem:[%s4353_s11 + $0x48] sm:$0xff] }
0x28ac   :  { %2387 = vrot.lane.b32.xlu1 %v2384_v46, %s3720_s3  ;;  %v2385_v49 = vmul.f32 %v2384_v46, %v2269_v19  ;;  %v3441_v45 = vpack.c.bf16 %v2662_v44, %v2661_v43 }
0x291e   :  { %v2388_v47 = vpop.permute.xlu1 %2387 }
0x291f   :  { %v2390_v48 = vmul.f32 %v2388_v47, %v2384_v46  ;;  %v2664_v47 = vld [vmem:[%s4353_s11 + $0x58] sm:$0xff] }
0x2921   :  { %2392 = vrot.lane.b32.xlu0 %v2390_v48, %s3721_s28 }
0x2993   :  { %v2393_v52 = vpop.permute.xlu0 %2392 }
0x2994   :  { %v2395_v53 = vadd.f32 %v2393_v52, %v2385_v49  ;;  %v2665_v49 = vld [vmem:[%s4353_s11 + $0x60] sm:$0xff]  ;;  %v2666_v52 = vld [vmem:[%s4353_s11 + $0x68] sm:$0xff] }
0x2996   :  { %3673 = vtanh.f32 %v2395_v53 }
0x29a0   :  { %v3674_v54 = vpop.eup %3673 }
0x29a1   :  { %2398 = vrot.lane.b32.xlu1 %v3674_v54, %s3720_s3  ;;  %v2667_v54 = vld [vmem:[%s4353_s11 + $0x70] sm:$0xff] }
0x2a13   :  { %v2399_v56 = vpop.permute.xlu1 %2398 }
0x2a14   :  { %v2401_v57 = vmul.f32 %v2399_v56, %v2384_v46  ;;  %v2663_v46 = vld [vmem:[%s4353_s11 + $0x50] sm:$0xff]  ;;  %v2668_v56 = vld [vmem:[%s4353_s11 + $0x78] sm:$0xff] }
0x2a15   :  { %v3444_v48 = vpack.c.bf16 %v2664_v47, %v2663_v46 }
0x2a16   :  { %2403 = vrot.lane.b32.xlu0 %v2401_v57, %s3721_s28  ;;  %v3450_v57 = vpack.c.bf16 %v2668_v56, %v2667_v54  ;;  %v2943_v56 = vld [vmem:[%s4356_s14] ss:$0 sm:$0xff] }
0x2a88   :  { %v2404_v58 = vpop.permute.xlu0 %2403 }
0x2a89   :  { %3255 = vmatmul.mubr.msk.f32.vlgmr.msra.gmra.mrb[14].mxu1 %vm159_vm6, %v2404_v58  ;;  %v2937_v58 = vld [vmem:[%s4350_s8] ss:$0 sm:$0xff] }
0x2a8a   :  { %3300 = vmatprep.mubr.msk.f32.mxu1 %vm3718_vm1, %v3719_v8  ;;  %3430 = vmatpush3.bf16.msra.mxu1 %v3429_v33 }
0x2a8b   :  { %3431 = vmatprep.subr.bf16.mxu1 %v3717_v6 }
0x2b5c   :  { %v2473_v7 = vpop.f32.mrb[14].mxu1 }
0x2b5d   :  { %v2478_v59 = vrot.slane %v2473_v7, 1  ;;  %v2479_v60 = vrot.slane %v2473_v7, 2  ;;  %v3256_v50 = vpop.f32.mrb[15].mxu1 }
0x2b5f   :  { %v2482_v12 = vadd.f32 %v2478_v59, %v4098_v10  ;;  %v2483_v61 = vadd.f32 %v2479_v60, %v4096_v5 }
0x2b61   :  { %v2935_v55 = vmul.f32 -1.442695, %v2482_v12  ;;  %v2936_v62 = vmul.f32 -1.442695, %v2483_v61 }
0x2b63   :  { %3675 = vpow2.f32 %v2935_v55 }
0x2b64   :  { %3677 = vpow2.f32 %v2936_v62 }
0x2b65   :  { %3679 = vtanh.f32 %v2482_v12 }
0x2b66   :  { %3681 = vtanh.f32 %v2483_v61 }
0x2b6d   :  { %v3676_v63 = vpop.eup %3675 }
0x2b6e   :  { %v3678_v0 = vpop.eup %3677  ;;  %v2492_v1 = vadd.f32 1.0, %v3676_v63 }
0x2b6f   :  { %v2493_v2 = vadd.f32 1.0, %v3678_v0  ;;  %v3680_v3 = vpop.eup %3679 }
0x2b70   :  { %3683 = vrcp.f32 %v2492_v1  ;;  %v3682_v51 = vpop.eup %3681  ;;  %v2500_v4 = vrot.slane %v3680_v3, 7 }
0x2b71   :  { %3685 = vrcp.f32 %v2493_v2  ;;  %v2501_v9 = vrot.slane %v3682_v51, 6 }
0x2b73   :  { %v2502_v13 = vsel %vm256_vm4, %v2501_v9, %v2500_v4 }
0x2b7a   :  { %v3684_v29 = vpop.eup %3683 }
0x2b7b   :  { %v3686_v10 = vpop.eup %3685  ;;  %v2506_v11 = vrot.slane %v3684_v29, 7 }
0x2b7c   :  { %v2507_v5 = vrot.slane %v3686_v10, 6 }
0x2b7e   :  { %v2508_v14 = vsel %vm256_vm4, %v2507_v5, %v2506_v11 }
0x2b7f   :  { %v2510_v15 = vsel %vm3874_vm5, %v2502_v13, %v2508_v14 }
0x2b80   :  { %2513 = vrot.lane.b32.xlu1 %v2510_v15, %s3720_s3  ;;  %v2511_v20 = vmul.f32 %v2510_v15, %v2395_v53  ;;  %v3447_v53 = vpack.c.bf16 %v2666_v52, %v2665_v49 }
0x2bf2   :  { %v2514_v17 = vpop.permute.xlu1 %2513 }
0x2bf3   :  { %v2516_v19 = vmul.f32 %v2514_v17, %v2510_v15  ;;  %v2939_v17 = vld [vmem:[%s4351_s9] ss:$0 sm:$0xff] }
0x2bf5   :  { %2518 = vrot.lane.b32.xlu0 %v2516_v19, %s3721_s28 }
0x2c67   :  { %v2519_v21 = vpop.permute.xlu0 %2518 }
0x2c68   :  { %v2521_v22 = vadd.f32 %v2519_v21, %v2511_v20  ;;  %v2940_v20 = vld [vmem:[%s4352_s10] ss:$0 sm:$0xff] }
0x2c6a   :  { %3687 = vtanh.f32 %v2521_v22 }
0x2c74   :  { %v3688_v28 = vpop.eup %3687 }
0x2c75   :  { %2524 = vrot.lane.b32.xlu1 %v3688_v28, %s3720_s3  ;;  %v3456_v28 = vpack.c.bf16 %v2788_v27, %v2787_v26 }
0x2ce7   :  { %v2525_v30 = vpop.permute.xlu1 %2524 }
0x2ce8   :  { %v2527_v31 = vmul.f32 %v2525_v30, %v2510_v15  ;;  %v2941_v30 = vld [vmem:[%s4354_s12] ss:$0 sm:$0xff] }
0x2cea   :  { %2540 = vrot.lane.b32.xlu0 %v2527_v31, %s3721_s28 }
0x2d5c   :  { %v2541_v16 = vpop.permute.xlu0 %2540 }
0x2d5d   :  { %3266 = vmatmul.mubr.msk.f32.vlgmr.msra.gmra.mrb[20].mxu0 %vm159_vm6, %v2541_v16 }
0x2d5e   :  { %3311 = vmatprep.mubr.msk.f32.mxu0 %vm3718_vm1, %v3719_v8  ;;  %v2656_v8 = vld [vmem:[%s4353_s11 + $0x18] sm:$0xff]  ;;  %3454 = vmatpush3.bf16.msra.mxu0 %v3453_v25 }
0x2d5f   :  { %v3432_v36 = vpack.c.bf16 %v2656_v8, %v2655_v34  ;;  %3455 = vmatprep.subr.bf16.mxu0 %v3717_v6 }
0x2d61   :  { %3433 = vmatpush3.bf16.msra.mxu1 %v3432_v36 }
0x2d62   :  { %3434 = vmatprep.subr.bf16.mxu1 %v3717_v6  ;;  %3457 = vmatpush3.bf16.msra.mxu0 %v3456_v28 }
0x2d65   :  { %3436 = vmatpush3.bf16.msra.mxu1 %v3435_v39 }
0x2d66   :  { %3437 = vmatprep.subr.bf16.mxu1 %v3717_v6 }
0x2d69   :  { %3439 = vmatpush3.bf16.msra.mxu1 %v3438_v42 }
0x2d6a   :  { %3440 = vmatprep.subr.bf16.mxu1 %v3717_v6 }
0x2d6d   :  { %3442 = vmatpush3.bf16.msra.mxu1 %v3441_v45 }
0x2d6e   :  { %3443 = vmatprep.subr.bf16.mxu1 %v3717_v6 }
0x2d71   :  { %3445 = vmatpush3.bf16.msra.mxu1 %v3444_v48 }
0x2d72   :  { %3446 = vmatprep.subr.bf16.mxu1 %v3717_v6 }
0x2d75   :  { %3448 = vmatpush3.bf16.msra.mxu1 %v3447_v53  ;;  %v2942_v53 = vld [vmem:[%s4355_s13] ss:$0 sm:$0xff]  ;;  %s3693_s13 = scalar_lea.vmem %s2878_s26, 32 }
0x2d76   :  { %3449 = vmatprep.subr.bf16.mxu1 %v3717_v6  ;;  %p3694_p0 = scmp.ne.s32.totalorder %s2878_s26, %s3693_s13  ;;  %p3699_p2 = scmp.lt.s32.totalorder %s3693_s13, %s3693_s13 }
0x2d78   :  { %p3700_p3 = por %p3699_p2, %p3698_p1 }
0x2d79   :  { %3451 = vmatpush3.bf16.msra.mxu1 %v3450_v57 }
0x2d7a   :  { %p3701_p4 = pnand %p3700_p3, %p3694_p0 }
0x2e30   :  { %v2610_v7 = vpop.f32.mrb[20].mxu0 }
0x2e31   :  { %v2611_v59 = vadd.f32 %v2937_v58, %v2610_v7  ;;  %v3267_v60 = vpop.f32.mrb[21].mxu0 }
0x2e33   :  { %v2616_v50 = vsel %vm1413_vm8, %v2611_v59, 0.0 }
0x2e34   :  { %v2617_v12 = vrot.slane %v2616_v50, 4 }
0x2e36   :  { %v2618_v61 = vadd.f32 %v2617_v12, %v2616_v50 }
0x2e38   :  { %v2619_v55 = vrot.slane %v2618_v61, 2 }
0x2e3a   :  { %v2620_v62 = vadd.f32 %v2619_v55, %v2618_v61 }
0x2e3c   :  { %v2621_v63 = vrot.slane %v2620_v62, 1 }
0x2e3e   :  { %v2622_v0 = vadd.f32 %v2621_v63, %v2620_v62 }
0x2e40   :  { %v2624_v1 = vmul.f32 0.5, %v2622_v0 }
0x2e42   :  { %v2625_v2 = vsub.f32 %v2611_v59, %v2624_v1  ;;  %v2944_v59 = vld [vmem:[%s4358_s16] ss:$0 sm:$0xff] }
0x2e44   :  { %v2626_v3 = vmul.f32 %v2625_v2, %v2625_v2 }
0x2e46   :  { %v2627_v51 = vsel %vm1413_vm8, %v2626_v3, 0.0 }
0x2e47   :  { %v2628_v29 = vrot.slane %v2627_v51, 4 }
0x2e49   :  { %v2629_v4 = vadd.f32 %v2628_v29, %v2627_v51 }
0x2e4b   :  { %v2630_v9 = vrot.slane %v2629_v4, 2 }
0x2e4d   :  { %v2631_v10 = vadd.f32 %v2630_v9, %v2629_v4 }
0x2e4f   :  { %v2632_v11 = vrot.slane %v2631_v10, 1 }
0x2e51   :  { %v2633_v5 = vadd.f32 %v2632_v11, %v2631_v10 }
0x2e53   :  { %v2634_v13 = vmul.f32 0.5, %v2633_v5 }
0x2e55   :  { %v2635_v14 = vadd.f32 1e-05, %v2634_v13 }
0x2e57   :  { %3689 = vrsqrt.f32 %v2635_v14 }
0x2e61   :  { %v3690_v15 = vpop.eup %3689 }
0x2e62   :  { %v2637_v19 = vmul.f32 %v3690_v15, %v2625_v2 }
0x2e64   :  { %v2644_v21 = vmul.f32 %v2939_v17, %v2637_v19 }
0x2e66   :  { %v2651_v22 = vadd.f32 %v2940_v20, %v2644_v21 }
0x2e68   :  { %v2652_v23 = vmax.f32 %v2651_v22, 0.0 }
0x2e6a   :  { %3301 = vmatmul.mubr.f32.vlgmr.msra.gmra.mrb[16].mxu1 %v2652_v23 }
0x2f3d   :  { %v2742_v31 = vpop.f32.mrb[16].mxu1 }
0x2f3e   :  { %v2743_v16 = vadd.f32 %v2941_v30, %v2742_v31  ;;  %v3302_v32 = vpop.f32.mrb[17].mxu1 }
0x2f40   :  { %v2749_v18 = vsel %vm2748_vm14, %v2743_v16, 0.0 }
0x2f41   :  { %v2750_v6 = vrot.slane %v2749_v18, 4 }
0x2f43   :  { %v2751_v33 = vadd.f32 %v2750_v6, %v2749_v18 }
0x2f45   :  { %v2752_v34 = vrot.slane %v2751_v33, 2 }
0x2f47   :  { %v2753_v8 = vadd.f32 %v2752_v34, %v2751_v33 }
0x2f49   :  { %v2754_v36 = vrot.slane %v2753_v8, 1 }
0x2f4b   :  { %v2755_v37 = vadd.f32 %v2754_v36, %v2753_v8 }
0x2f4d   :  { %v2756_v38 = vmul.f32 0.5, %v2755_v37 }
0x2f4f   :  { %v2757_v39 = vsub.f32 %v2743_v16, %v2756_v38 }
0x2f51   :  { %v2758_v40 = vmul.f32 %v2757_v39, %v2757_v39 }
0x2f53   :  { %v2759_v41 = vsel %vm2748_vm14, %v2758_v40, 0.0 }
0x2f54   :  { %v2760_v42 = vrot.slane %v2759_v41, 4 }
0x2f56   :  { %v2761_v43 = vadd.f32 %v2760_v42, %v2759_v41 }
0x2f58   :  { %v2762_v44 = vrot.slane %v2761_v43, 2 }
0x2f5a   :  { %v2763_v45 = vadd.f32 %v2762_v44, %v2761_v43 }
0x2f5c   :  { %v2764_v46 = vrot.slane %v2763_v45, 1 }
0x2f5e   :  { %v2765_v47 = vadd.f32 %v2764_v46, %v2763_v45 }
0x2f60   :  { %v2766_v48 = vmul.f32 0.5, %v2765_v47 }
0x2f62   :  { %v2767_v49 = vadd.f32 1e-05, %v2766_v48 }
0x2f64   :  { %3691 = vrsqrt.f32 %v2767_v49 }
0x2f6e   :  { %v3692_v52 = vpop.eup %3691 }
0x2f6f   :  { %v2769_v54 = vmul.f32 %v3692_v52, %v2757_v39 }
0x2f71   :  { %v2776_v57 = vmul.f32 %v2942_v53, %v2769_v54 }
0x2f73   :  { %v2783_v58 = vadd.f32 %v2943_v56, %v2776_v57 }
0x2f75   :  { %v2784_v7 = vmax.f32 %v2783_v58, 0.0 }
0x2f77   :  { %3312 = vmatmul.mubr.msk.f32.vlgmr.msra.gmra.mrb[22].mxu0 %vm159_vm6, %v2784_v7 }
0x304a   :  { %v2865_v60 = vpop.f32.mrb[22].mxu0 }
0x304b   :  { %v2866_v50 = vadd.f32 %v2944_v59, %v2865_v60  ;;  %v3313_v12 = vpop.f32.mrb[23].mxu0 }
0x304d   :  { %2870 = vst.msk [vmem:[#allocation2] sm:$0x3] %vm2869_vm15, %v2866_v50 }
0x304e   :  { %3704 = shalt.err (!%p3701_p4)
}
0x304f   :  { %s3705_s27 = scalar_lea.hbm %s4359_s17, 32 }
0x3050   :  { %p3706_p5 = scmp.ne.s32.totalorder %s4359_s17, %s3705_s27  ;;  %p3709_p6 = scmp.lt.u32.totalorder %s3705_s27, %s4359_s17 }
0x3052   :  { %p3711_p7 = pnand %p3709_p6, %p3706_p5 }
0x3054   :  { %3714 = shalt.err (!%p3711_p7)
}
0x3055   :  { %2880 = dma.vmem_to_hbm [thread:$0]  %s2878_s26, 32, %s4359_s17, [#allocation3]  }
0x3056   :  { %3715 = dma.done.wait [#allocation3], 32  }
0x3057   :  { %3716 = vsyncadd [#allocation3], 4294967264 }
0x3058   :  { %2884 = vsyncpa [#allocation3], 1 }

</bundles_post_ra>
